<compile_context>
chip_gen: v7x
topology: tpu7x:2x2x1
jax: 0.10.0
libtpu: 0.0.40
codegen_flags: <defaults>
</compile_context>

<pallas_src>
import functools

import jax
import jax.numpy as jnp
import numpy as np
from jax.experimental import pallas as pl
from jax.experimental.pallas import tpu as pltpu


def _make_lstm_kernel(n_layers, n_periods, n_hidden):
    H = n_hidden
    T = n_periods
    L = n_layers

    def kernel(*refs):
        # refs layout:
        #   x_ref (T,B,F) bf16, h0_ref (L,B,H) f32, c0_ref (L,B,H) f32,
        #   [w_ih_l (in,4H) bf16, w_hh_l (H,4H) bf16, b_l (1,4H) f32] * L,
        #   w_fc (T,H) f32, b_fc (1,1) f32,
        #   out_ref (B,1) f32, hn_ref (L,B,H) f32, cn_ref (L,B,H) f32
        x_ref, h0_ref, c0_ref = refs[0], refs[1], refs[2]
        idx = 3
        layer_refs = []
        for _ in range(L):
            layer_refs.append((refs[idx], refs[idx + 1], refs[idx + 2]))
            idx += 3
        wfc_ref, bfc_ref = refs[idx], refs[idx + 1]
        out_ref, hn_ref, cn_ref = refs[idx + 2], refs[idx + 3], refs[idx + 4]

        # Layer-0 inputs: time-major, contiguous leading-dim reads (bf16).
        seq = [x_ref[t] for t in range(T)]                    # list of (B, in) bf16

        last_outs = None
        for l, (wih_ref, whh_ref, b_ref) in enumerate(layer_refs):
            wih = wih_ref[...]                                # (in, 4H) bf16
            whh = whh_ref[...]                                # (H, 4H) bf16
            b = b_ref[...]                                    # (1, 4H)  f32

            # Hoisted input projection + bias: independent of the recurrence,
            # so these T matmuls are off the serial per-step chain.
            xw = [
                jnp.dot(seq[t], wih, preferred_element_type=jnp.float32) + b
                for t in range(T)
            ]                                                 # list of (B, 4H) f32

            h = h0_ref[l]                                     # (B, H) f32
            c = c0_ref[l]                                     # (B, H) f32

            outs = []
            for t in range(T):
                gates = xw[t] + jnp.dot(
                    h.astype(jnp.bfloat16), whh,
                    preferred_element_type=jnp.float32)       # (B, 4H) f32
                # Two full-vreg EUP passes, then 32-lane chunk extracts.
                sig = jax.nn.sigmoid(gates)
                tnh = jnp.tanh(gates)
                # PyTorch gate order: input, forget, cell(g), output
                i_g = sig[:, 0 * H:1 * H]
                f_g = sig[:, 1 * H:2 * H]
                g_g = tnh[:, 2 * H:3 * H]
                o_g = sig[:, 3 * H:4 * H]
                c = f_g * c + i_g * g_g
                h = o_g * jnp.tanh(c)
                outs.append(h)

            hn_ref[l] = h.astype(hn_ref.dtype)
            cn_ref[l] = c.astype(cn_ref.dtype)

            if l + 1 < L:
                # TODO(synk): nn.Dropout between LSTM layers is identity at inference.
                seq = [o.astype(jnp.bfloat16) for o in outs]
            else:
                last_outs = outs

        # FC head: out[b] = sum_t sum_j h_t[b,j] * w_fc[t,j] + b_fc
        # (VPU multiply-accumulate + a single lane reduction; replaces the
        #  N=1 MXU matmul and the time-concatenate.)
        wfc = wfc_ref[...]                                    # (T, H) f32
        fc_acc = last_outs[0] * wfc[0:1, :]
        for t in range(1, T):
            fc_acc = fc_acc + last_outs[t] * wfc[t:t + 1, :]
        out = jnp.sum(fc_acc, axis=-1, keepdims=True) + bfc_ref[...]
        out_ref[...] = out.astype(out_ref.dtype)

    return kernel


def init_stock_lstm_params(key, n_features, n_periods, n_hidden, n_layers):
    """Deterministic PyTorch-style uniform(-1/sqrt(H), 1/sqrt(H)) init (module layout)."""
    H = n_hidden
    bound = 1.0 / np.sqrt(H)
    params = {"layers": []}
    for l in range(n_layers):
        in_dim = n_features if l == 0 else n_hidden
        key, k1, k2, k3, k4 = jax.random.split(key, 5)
        w_ih = jax.random.uniform(k1, (4 * H, in_dim), jnp.float32, -bound, bound)
        w_hh = jax.random.uniform(k2, (4 * H, H), jnp.float32, -bound, bound)
        b_ih = jax.random.uniform(k3, (4 * H,), jnp.float32, -bound, bound)
        b_hh = jax.random.uniform(k4, (4 * H,), jnp.float32, -bound, bound)
        params["layers"].append((w_ih, w_hh, b_ih, b_hh))
    key, k5, k6 = jax.random.split(key, 3)
    fc_in = n_hidden * n_periods
    fc_bound = 1.0 / np.sqrt(fc_in)
    params["fc_w"] = jax.random.uniform(k5, (1, fc_in), jnp.float32, -fc_bound, fc_bound)
    params["fc_b"] = jax.random.uniform(k6, (1,), jnp.float32, -fc_bound, fc_bound)
    return params


def prepare_kernel_params(params, n_periods, n_hidden):
    """One-time conversion of PyTorch-layout params into kernel-ready layout.

    (Transposes, combined biases and bf16 casts happen here ONCE, not on every
     forward call.)
    """
    H, T = n_hidden, n_periods
    kp = {"layers": []}
    for (w_ih, w_hh, b_ih, b_hh) in params["layers"]:
        kp["layers"].append((
            jnp.transpose(w_ih).astype(jnp.bfloat16),              # (in, 4H)
            jnp.transpose(w_hh).astype(jnp.bfloat16),              # (H, 4H)
            (b_ih + b_hh).reshape(1, 4 * H).astype(jnp.float32),   # (1, 4H)
        ))
    # fc_w is (1, T*H); flat view is time-major (t outer, hidden inner).
    kp["fc_w"] = params["fc_w"].reshape(T, H).astype(jnp.float32)  # (T, H)
    kp["fc_b"] = params["fc_b"].reshape(1, 1).astype(jnp.float32)  # (1, 1)
    return kp


def stock_lstm_forward(kparams, x, hidden, *, n_layers, n_periods, n_hidden):
    """Mirrors StockLSTM.forward (inference).

    Args:
      x:      (B, T, F)   float32
      hidden: tuple of (h, c), each (B, n_layers, n_hidden)  -- module layout
    Returns:
      out:    (B, 1)
      hidden: tuple of (h, c), each (B, n_layers, n_hidden)
    """
    B = x.shape[0]
    H, T, L = n_hidden, n_periods, n_layers

    # module does h.permute(1, 0, 2) -> (L, B, H)
    h0 = jnp.transpose(hidden[0], (1, 0, 2)).astype(jnp.float32)
    c0 = jnp.transpose(hidden[1], (1, 0, 2)).astype(jnp.float32)
    # time-major input so the kernel only indexes the leading dim
    x_tm = jnp.transpose(x, (1, 0, 2)).astype(jnp.bfloat16)        # (T, B, F)

    kernel_inputs = [x_tm, h0, c0]
    for (wih, whh, b) in kparams["layers"]:
        kernel_inputs += [wih, whh, b]
    kernel_inputs += [kparams["fc_w"], kparams["fc_b"]]

    kernel = _make_lstm_kernel(L, T, H)
    vspec = pl.BlockSpec(memory_space=pltpu.MemorySpace.VMEM)

    out, h_n, c_n = pl.pallas_call(
        kernel,
        out_shape=(
            jax.ShapeDtypeStruct((B, 1), jnp.float32),
            jax.ShapeDtypeStruct((L, B, H), jnp.float32),
            jax.ShapeDtypeStruct((L, B, H), jnp.float32),
        ),
        in_specs=[vspec] * len(kernel_inputs),
        out_specs=(vspec, vspec, vspec),
        # Whole working set is ~100 KiB; single no-grid invocation on purpose.
        compiler_params=pltpu.CompilerParams(vmem_limit_bytes=16 * 1024 * 1024),
    )(*kernel_inputs)

    # module permutes hidden back to (B, L, H)
    h_out = jnp.transpose(h_n, (1, 0, 2))
    c_out = jnp.transpose(c_n, (1, 0, 2))
    return out, (h_out, c_out)


def _reference_forward_matched(kparams, x, hidden, *, n_layers, n_periods, n_hidden):
    """Pure-JAX reference using the SAME numerics as the kernel (bf16 matmul
    inputs, f32 accumulation / elementwise)."""
    H, T, L = n_hidden, n_periods, n_layers
    h0 = jnp.transpose(hidden[0], (1, 0, 2)).astype(jnp.float32)
    c0 = jnp.transpose(hidden[1], (1, 0, 2)).astype(jnp.float32)
    seq = [x[:, t, :].astype(jnp.bfloat16) for t in range(T)]
    h_fin, c_fin = [], []
    outs = None
    for l, (wih, whh, b) in enumerate(kparams["layers"]):
        h, c = h0[l], c0[l]
        outs = []
        for t in range(T):
            gates = (jnp.dot(seq[t], wih, preferred_element_type=jnp.float32)
                     + jnp.dot(h.astype(jnp.bfloat16), whh,
                               preferred_element_type=jnp.float32)
                     + b)
            i_g = jax.nn.sigmoid(gates[:, 0 * H:1 * H])
            f_g = jax.nn.sigmoid(gates[:, 1 * H:2 * H])
            g_g = jnp.tanh(gates[:, 2 * H:3 * H])
            o_g = jax.nn.sigmoid(gates[:, 3 * H:4 * H])
            c = f_g * c + i_g * g_g
            h = o_g * jnp.tanh(c)
            outs.append(h)
        h_fin.append(h)
        c_fin.append(c)
        seq = [o.astype(jnp.bfloat16) for o in outs]
    flat = jnp.concatenate(outs, axis=-1)                       # (B, T*H)
    out = flat @ kparams["fc_w"].reshape(T * H, 1) + kparams["fc_b"]
    h_n = jnp.transpose(jnp.stack(h_fin, 0), (1, 0, 2))
    c_n = jnp.transpose(jnp.stack(c_fin, 0), (1, 0, 2))
    return out, (h_n, c_n)


def _reference_forward_f32(params, x, hidden, *, n_layers, n_periods, n_hidden):
    """Full-f32 reference of the original module semantics (loose sanity check)."""
    H = n_hidden
    h0 = jnp.transpose(hidden[0], (1, 0, 2))
    c0 = jnp.transpose(hidden[1], (1, 0, 2))
    seq = x
    h_fin, c_fin = [], []
    for l, (w_ih, w_hh, b_ih, b_hh) in enumerate(params["layers"]):
        h, c = h0[l], c0[l]
        outs = []
        for t in range(n_periods):
            gates = seq[:, t, :] @ w_ih.T + h @ w_hh.T + b_ih + b_hh
            i_g = jax.nn.sigmoid(gates[:, 0 * H:1 * H])
            f_g = jax.nn.sigmoid(gates[:, 1 * H:2 * H])
            g_g = jnp.tanh(gates[:, 2 * H:3 * H])
            o_g = jax.nn.sigmoid(gates[:, 3 * H:4 * H])
            c = f_g * c + i_g * g_g
            h = o_g * jnp.tanh(c)
            outs.append(h)
        seq = jnp.stack(outs, axis=1)
        h_fin.append(h)
        c_fin.append(c)
    flat = seq.reshape(seq.shape[0], -1)
    out = flat @ params["fc_w"].T + params["fc_b"]
    h_n = jnp.transpose(jnp.stack(h_fin, 0), (1, 0, 2))
    c_n = jnp.transpose(jnp.stack(c_fin, 0), (1, 0, 2))
    return out, (h_n, c_n)


if __name__ == "__main__":
    # Small shapes implied by the module: batch=2, seq(n_periods)=8,
    # n_features=4, n_hidden=32, n_layers=2.
    B, T, F, H, L = 2, 8, 4, 32, 2

    key = jax.random.PRNGKey(0)
    key, kx = jax.random.split(key)
    x = jax.random.normal(kx, (B, T, F), jnp.float32)

    params = init_stock_lstm_params(key, F, T, H, L)
    kparams = prepare_kernel_params(params, T, H)   # one-time weight prep

    # init_hidden: zeros of shape (batch, n_layers, n_hidden)
    hidden = (jnp.zeros((B, L, H), jnp.float32), jnp.zeros((B, L, H), jnp.float32))

    fwd = jax.jit(functools.partial(
        stock_lstm_forward, n_layers=L, n_periods=T, n_hidden=H))
    out, (h_n, c_n) = fwd(kparams, x, hidden)
    jax.block_until_ready((out, h_n, c_n))

    # Tight check against a numerics-matched pure-JAX reference.
    ref_out, (ref_h, ref_c) = _reference_forward_matched(
        kparams, x, hidden, n_layers=L, n_periods=T, n_hidden=H)
    np.testing.assert_allclose(np.asarray(out), np.asarray(ref_out), rtol=1e-3, atol=1e-3)
    np.testing.assert_allclose(np.asarray(h_n), np.asarray(ref_h), rtol=1e-3, atol=1e-3)
    np.testing.assert_allclose(np.asarray(c_n), np.asarray(ref_c), rtol=1e-3, atol=1e-3)

    # Loose sanity check against the full-f32 module semantics (bf16 matmul inputs
    # introduce small, bounded differences).
    f32_out, (f32_h, f32_c) = _reference_forward_f32(
        params, x, hidden, n_layers=L, n_periods=T, n_hidden=H)
    np.testing.assert_allclose(np.asarray(out), np.asarray(f32_out), rtol=0.1, atol=0.1)
    np.testing.assert_allclose(np.asarray(h_n), np.asarray(f32_h), rtol=0.1, atol=0.1)
    np.testing.assert_allclose(np.asarray(c_n), np.asarray(f32_c), rtol=0.1, atol=0.1)

    assert out.shape == (B, 1)
    assert h_n.shape == (B, L, H) and c_n.shape == (B, L, H)
    print("KERNEL_OK")
</pallas_src>

<mosaic_0001>
module attributes {stable_mosaic.version = 11 : i64} {
  func.func @kernel(%arg0: memref<8x2x4xbf16, #tpu.memory_space<vmem>>, %arg1: memref<2x2x32xf32, #tpu.memory_space<vmem>>, %arg2: memref<2x2x32xf32, #tpu.memory_space<vmem>>, %arg3: memref<4x128xbf16, #tpu.memory_space<vmem>>, %arg4: memref<32x128xbf16, #tpu.memory_space<vmem>>, %arg5: memref<1x128xf32, #tpu.memory_space<vmem>>, %arg6: memref<32x128xbf16, #tpu.memory_space<vmem>>, %arg7: memref<32x128xbf16, #tpu.memory_space<vmem>>, %arg8: memref<1x128xf32, #tpu.memory_space<vmem>>, %arg9: memref<8x32xf32, #tpu.memory_space<vmem>>, %arg10: memref<1x1xf32, #tpu.memory_space<vmem>>, %arg11: memref<2x1xf32, #tpu.memory_space<vmem>>, %arg12: memref<2x2x32xf32, #tpu.memory_space<vmem>>, %arg13: memref<2x2x32xf32, #tpu.memory_space<vmem>>) attributes {dimension_semantics = [], scalar_prefetch = 0 : i64, scratch_operands = 0 : i64, tpu.core_type = #tpu.core_type<tc>} {
    %c0 = arith.constant 0 : index
    %c0_0 = arith.constant 0 : index
    %c0_1 = arith.constant 0 : index
    %0 = vector.load %arg0[%c0, %c0_0, %c0_1] : memref<8x2x4xbf16, #tpu.memory_space<vmem>>, vector<1x2x4xbf16>
    %1 = vector.shape_cast %0 : vector<1x2x4xbf16> to vector<2x4xbf16>
    %c1 = arith.constant 1 : index
    %c0_2 = arith.constant 0 : index
    %c0_3 = arith.constant 0 : index
    %2 = vector.load %arg0[%c1, %c0_2, %c0_3] : memref<8x2x4xbf16, #tpu.memory_space<vmem>>, vector<1x2x4xbf16>
    %3 = vector.shape_cast %2 : vector<1x2x4xbf16> to vector<2x4xbf16>
    %c2 = arith.constant 2 : index
    %c0_4 = arith.constant 0 : index
    %c0_5 = arith.constant 0 : index
    %4 = vector.load %arg0[%c2, %c0_4, %c0_5] : memref<8x2x4xbf16, #tpu.memory_space<vmem>>, vector<1x2x4xbf16>
    %5 = vector.shape_cast %4 : vector<1x2x4xbf16> to vector<2x4xbf16>
    %c3 = arith.constant 3 : index
    %c0_6 = arith.constant 0 : index
    %c0_7 = arith.constant 0 : index
    %6 = vector.load %arg0[%c3, %c0_6, %c0_7] : memref<8x2x4xbf16, #tpu.memory_space<vmem>>, vector<1x2x4xbf16>
    %7 = vector.shape_cast %6 : vector<1x2x4xbf16> to vector<2x4xbf16>
    %c4 = arith.constant 4 : index
    %c0_8 = arith.constant 0 : index
    %c0_9 = arith.constant 0 : index
    %8 = vector.load %arg0[%c4, %c0_8, %c0_9] : memref<8x2x4xbf16, #tpu.memory_space<vmem>>, vector<1x2x4xbf16>
    %9 = vector.shape_cast %8 : vector<1x2x4xbf16> to vector<2x4xbf16>
    %c5 = arith.constant 5 : index
    %c0_10 = arith.constant 0 : index
    %c0_11 = arith.constant 0 : index
    %10 = vector.load %arg0[%c5, %c0_10, %c0_11] : memref<8x2x4xbf16, #tpu.memory_space<vmem>>, vector<1x2x4xbf16>
    %11 = vector.shape_cast %10 : vector<1x2x4xbf16> to vector<2x4xbf16>
    %c6 = arith.constant 6 : index
    %c0_12 = arith.constant 0 : index
    %c0_13 = arith.constant 0 : index
    %12 = vector.load %arg0[%c6, %c0_12, %c0_13] : memref<8x2x4xbf16, #tpu.memory_space<vmem>>, vector<1x2x4xbf16>
    %13 = vector.shape_cast %12 : vector<1x2x4xbf16> to vector<2x4xbf16>
    %c7 = arith.constant 7 : index
    %c0_14 = arith.constant 0 : index
    %c0_15 = arith.constant 0 : index
    %14 = vector.load %arg0[%c7, %c0_14, %c0_15] : memref<8x2x4xbf16, #tpu.memory_space<vmem>>, vector<1x2x4xbf16>
    %15 = vector.shape_cast %14 : vector<1x2x4xbf16> to vector<2x4xbf16>
    %c0_16 = arith.constant 0 : index
    %c0_17 = arith.constant 0 : index
    %16 = vector.load %arg3[%c0_16, %c0_17] : memref<4x128xbf16, #tpu.memory_space<vmem>>, vector<4x128xbf16>
    %c0_18 = arith.constant 0 : index
    %c0_19 = arith.constant 0 : index
    %17 = vector.load %arg4[%c0_18, %c0_19] : memref<32x128xbf16, #tpu.memory_space<vmem>>, vector<32x128xbf16>
    %c0_20 = arith.constant 0 : index
    %c0_21 = arith.constant 0 : index
    %18 = vector.load %arg5[%c0_20, %c0_21] : memref<1x128xf32, #tpu.memory_space<vmem>>, vector<1x128xf32>
    %cst = arith.constant dense<0.000000e+00> : vector<2x128xf32>
    %19 = tpu.matmul %1, %16, %cst {dimension_numbers = #tpu.dot_dimension_numbers<[1], [0], [0], [1], [0, 0, 1, 1], [], []>} : vector<2x4xbf16>, vector<4x128xbf16>, vector<2x128xf32> -> vector<2x128xf32>
    %20 = vector.broadcast %18 : vector<1x128xf32> to vector<2x128xf32>
    %21 = arith.addf %19, %20 : vector<2x128xf32>
    %cst_22 = arith.constant dense<0.000000e+00> : vector<2x128xf32>
    %22 = tpu.matmul %3, %16, %cst_22 {dimension_numbers = #tpu.dot_dimension_numbers<[1], [0], [0], [1], [0, 0, 1, 1], [], []>} : vector<2x4xbf16>, vector<4x128xbf16>, vector<2x128xf32> -> vector<2x128xf32>
    %23 = vector.broadcast %18 : vector<1x128xf32> to vector<2x128xf32>
    %24 = arith.addf %22, %23 : vector<2x128xf32>
    %cst_23 = arith.constant dense<0.000000e+00> : vector<2x128xf32>
    %25 = tpu.matmul %5, %16, %cst_23 {dimension_numbers = #tpu.dot_dimension_numbers<[1], [0], [0], [1], [0, 0, 1, 1], [], []>} : vector<2x4xbf16>, vector<4x128xbf16>, vector<2x128xf32> -> vector<2x128xf32>
    %26 = vector.broadcast %18 : vector<1x128xf32> to vector<2x128xf32>
    %27 = arith.addf %25, %26 : vector<2x128xf32>
    %cst_24 = arith.constant dense<0.000000e+00> : vector<2x128xf32>
    %28 = tpu.matmul %7, %16, %cst_24 {dimension_numbers = #tpu.dot_dimension_numbers<[1], [0], [0], [1], [0, 0, 1, 1], [], []>} : vector<2x4xbf16>, vector<4x128xbf16>, vector<2x128xf32> -> vector<2x128xf32>
    %29 = vector.broadcast %18 : vector<1x128xf32> to vector<2x128xf32>
    %30 = arith.addf %28, %29 : vector<2x128xf32>
    %cst_25 = arith.constant dense<0.000000e+00> : vector<2x128xf32>
    %31 = tpu.matmul %9, %16, %cst_25 {dimension_numbers = #tpu.dot_dimension_numbers<[1], [0], [0], [1], [0, 0, 1, 1], [], []>} : vector<2x4xbf16>, vector<4x128xbf16>, vector<2x128xf32> -> vector<2x128xf32>
    %32 = vector.broadcast %18 : vector<1x128xf32> to vector<2x128xf32>
    %33 = arith.addf %31, %32 : vector<2x128xf32>
    %cst_26 = arith.constant dense<0.000000e+00> : vector<2x128xf32>
    %34 = tpu.matmul %11, %16, %cst_26 {dimension_numbers = #tpu.dot_dimension_numbers<[1], [0], [0], [1], [0, 0, 1, 1], [], []>} : vector<2x4xbf16>, vector<4x128xbf16>, vector<2x128xf32> -> vector<2x128xf32>
    %35 = vector.broadcast %18 : vector<1x128xf32> to vector<2x128xf32>
    %36 = arith.addf %34, %35 : vector<2x128xf32>
    %cst_27 = arith.constant dense<0.000000e+00> : vector<2x128xf32>
    %37 = tpu.matmul %13, %16, %cst_27 {dimension_numbers = #tpu.dot_dimension_numbers<[1], [0], [0], [1], [0, 0, 1, 1], [], []>} : vector<2x4xbf16>, vector<4x128xbf16>, vector<2x128xf32> -> vector<2x128xf32>
    %38 = vector.broadcast %18 : vector<1x128xf32> to vector<2x128xf32>
    %39 = arith.addf %37, %38 : vector<2x128xf32>
    %cst_28 = arith.constant dense<0.000000e+00> : vector<2x128xf32>
    %40 = tpu.matmul %15, %16, %cst_28 {dimension_numbers = #tpu.dot_dimension_numbers<[1], [0], [0], [1], [0, 0, 1, 1], [], []>} : vector<2x4xbf16>, vector<4x128xbf16>, vector<2x128xf32> -> vector<2x128xf32>
    %41 = vector.broadcast %18 : vector<1x128xf32> to vector<2x128xf32>
    %42 = arith.addf %40, %41 : vector<2x128xf32>
    %c0_29 = arith.constant 0 : index
    %c0_30 = arith.constant 0 : index
    %c0_31 = arith.constant 0 : index
    %43 = vector.load %arg1[%c0_29, %c0_30, %c0_31] : memref<2x2x32xf32, #tpu.memory_space<vmem>>, vector<1x2x32xf32>
    %44 = vector.shape_cast %43 : vector<1x2x32xf32> to vector<2x32xf32>
    %c0_32 = arith.constant 0 : index
    %c0_33 = arith.constant 0 : index
    %c0_34 = arith.constant 0 : index
    %45 = vector.load %arg2[%c0_32, %c0_33, %c0_34] : memref<2x2x32xf32, #tpu.memory_space<vmem>>, vector<1x2x32xf32>
    %46 = vector.shape_cast %45 : vector<1x2x32xf32> to vector<2x32xf32>
    %47 = arith.truncf %44 : vector<2x32xf32> to vector<2x32xbf16>
    %cst_35 = arith.constant dense<0.000000e+00> : vector<2x128xf32>
    %48 = tpu.matmul %47, %17, %cst_35 {dimension_numbers = #tpu.dot_dimension_numbers<[1], [0], [0], [1], [0, 0, 1, 1], [], []>} : vector<2x32xbf16>, vector<32x128xbf16>, vector<2x128xf32> -> vector<2x128xf32>
    %49 = arith.addf %21, %48 : vector<2x128xf32>
    %50 = arith.negf %49 : vector<2x128xf32>
    %51 = math.exp %50 : vector<2x128xf32>
    %cst_36 = arith.constant 1.000000e+00 : f32
    %52 = vector.broadcast %cst_36 : f32 to vector<2x128xf32>
    %53 = arith.addf %52, %51 : vector<2x128xf32>
    %54 = arith.divf %52, %53 : vector<2x128xf32>
    %55 = math.tanh %49 : vector<2x128xf32>
    %56 = vector.extract_strided_slice %54 {offsets = [0, 0], sizes = [2, 32], strides = [1, 1]} : vector<2x128xf32> to vector<2x32xf32>
    %57 = vector.extract_strided_slice %54 {offsets = [0, 32], sizes = [2, 32], strides = [1, 1]} : vector<2x128xf32> to vector<2x32xf32>
    %58 = vector.extract_strided_slice %55 {offsets = [0, 64], sizes = [2, 32], strides = [1, 1]} : vector<2x128xf32> to vector<2x32xf32>
    %59 = vector.extract_strided_slice %54 {offsets = [0, 96], sizes = [2, 32], strides = [1, 1]} : vector<2x128xf32> to vector<2x32xf32>
    %60 = arith.mulf %57, %46 : vector<2x32xf32>
    %61 = arith.mulf %56, %58 : vector<2x32xf32>
    %62 = arith.addf %60, %61 : vector<2x32xf32>
    %63 = math.tanh %62 : vector<2x32xf32>
    %64 = arith.mulf %59, %63 : vector<2x32xf32>
    %65 = arith.truncf %64 : vector<2x32xf32> to vector<2x32xbf16>
    %cst_37 = arith.constant dense<0.000000e+00> : vector<2x128xf32>
    %66 = tpu.matmul %65, %17, %cst_37 {dimension_numbers = #tpu.dot_dimension_numbers<[1], [0], [0], [1], [0, 0, 1, 1], [], []>} : vector<2x32xbf16>, vector<32x128xbf16>, vector<2x128xf32> -> vector<2x128xf32>
    %67 = arith.addf %24, %66 : vector<2x128xf32>
    %68 = arith.negf %67 : vector<2x128xf32>
    %69 = math.exp %68 : vector<2x128xf32>
    %cst_38 = arith.constant 1.000000e+00 : f32
    %70 = vector.broadcast %cst_38 : f32 to vector<2x128xf32>
    %71 = arith.addf %70, %69 : vector<2x128xf32>
    %72 = arith.divf %70, %71 : vector<2x128xf32>
    %73 = math.tanh %67 : vector<2x128xf32>
    %74 = vector.extract_strided_slice %72 {offsets = [0, 0], sizes = [2, 32], strides = [1, 1]} : vector<2x128xf32> to vector<2x32xf32>
    %75 = vector.extract_strided_slice %72 {offsets = [0, 32], sizes = [2, 32], strides = [1, 1]} : vector<2x128xf32> to vector<2x32xf32>
    %76 = vector.extract_strided_slice %73 {offsets = [0, 64], sizes = [2, 32], strides = [1, 1]} : vector<2x128xf32> to vector<2x32xf32>
    %77 = vector.extract_strided_slice %72 {offsets = [0, 96], sizes = [2, 32], strides = [1, 1]} : vector<2x128xf32> to vector<2x32xf32>
    %78 = arith.mulf %75, %62 : vector<2x32xf32>
    %79 = arith.mulf %74, %76 : vector<2x32xf32>
    %80 = arith.addf %78, %79 : vector<2x32xf32>
    %81 = math.tanh %80 : vector<2x32xf32>
    %82 = arith.mulf %77, %81 : vector<2x32xf32>
    %83 = arith.truncf %82 : vector<2x32xf32> to vector<2x32xbf16>
    %cst_39 = arith.constant dense<0.000000e+00> : vector<2x128xf32>
    %84 = tpu.matmul %83, %17, %cst_39 {dimension_numbers = #tpu.dot_dimension_numbers<[1], [0], [0], [1], [0, 0, 1, 1], [], []>} : vector<2x32xbf16>, vector<32x128xbf16>, vector<2x128xf32> -> vector<2x128xf32>
    %85 = arith.addf %27, %84 : vector<2x128xf32>
    %86 = arith.negf %85 : vector<2x128xf32>
    %87 = math.exp %86 : vector<2x128xf32>
    %cst_40 = arith.constant 1.000000e+00 : f32
    %88 = vector.broadcast %cst_40 : f32 to vector<2x128xf32>
    %89 = arith.addf %88, %87 : vector<2x128xf32>
    %90 = arith.divf %88, %89 : vector<2x128xf32>
    %91 = math.tanh %85 : vector<2x128xf32>
    %92 = vector.extract_strided_slice %90 {offsets = [0, 0], sizes = [2, 32], strides = [1, 1]} : vector<2x128xf32> to vector<2x32xf32>
    %93 = vector.extract_strided_slice %90 {offsets = [0, 32], sizes = [2, 32], strides = [1, 1]} : vector<2x128xf32> to vector<2x32xf32>
    %94 = vector.extract_strided_slice %91 {offsets = [0, 64], sizes = [2, 32], strides = [1, 1]} : vector<2x128xf32> to vector<2x32xf32>
    %95 = vector.extract_strided_slice %90 {offsets = [0, 96], sizes = [2, 32], strides = [1, 1]} : vector<2x128xf32> to vector<2x32xf32>
    %96 = arith.mulf %93, %80 : vector<2x32xf32>
    %97 = arith.mulf %92, %94 : vector<2x32xf32>
    %98 = arith.addf %96, %97 : vector<2x32xf32>
    %99 = math.tanh %98 : vector<2x32xf32>
    %100 = arith.mulf %95, %99 : vector<2x32xf32>
    %101 = arith.truncf %100 : vector<2x32xf32> to vector<2x32xbf16>
    %cst_41 = arith.constant dense<0.000000e+00> : vector<2x128xf32>
    %102 = tpu.matmul %101, %17, %cst_41 {dimension_numbers = #tpu.dot_dimension_numbers<[1], [0], [0], [1], [0, 0, 1, 1], [], []>} : vector<2x32xbf16>, vector<32x128xbf16>, vector<2x128xf32> -> vector<2x128xf32>
    %103 = arith.addf %30, %102 : vector<2x128xf32>
    %104 = arith.negf %103 : vector<2x128xf32>
    %105 = math.exp %104 : vector<2x128xf32>
    %cst_42 = arith.constant 1.000000e+00 : f32
    %106 = vector.broadcast %cst_42 : f32 to vector<2x128xf32>
    %107 = arith.addf %106, %105 : vector<2x128xf32>
    %108 = arith.divf %106, %107 : vector<2x128xf32>
    %109 = math.tanh %103 : vector<2x128xf32>
    %110 = vector.extract_strided_slice %108 {offsets = [0, 0], sizes = [2, 32], strides = [1, 1]} : vector<2x128xf32> to vector<2x32xf32>
    %111 = vector.extract_strided_slice %108 {offsets = [0, 32], sizes = [2, 32], strides = [1, 1]} : vector<2x128xf32> to vector<2x32xf32>
    %112 = vector.extract_strided_slice %109 {offsets = [0, 64], sizes = [2, 32], strides = [1, 1]} : vector<2x128xf32> to vector<2x32xf32>
    %113 = vector.extract_strided_slice %108 {offsets = [0, 96], sizes = [2, 32], strides = [1, 1]} : vector<2x128xf32> to vector<2x32xf32>
    %114 = arith.mulf %111, %98 : vector<2x32xf32>
    %115 = arith.mulf %110, %112 : vector<2x32xf32>
    %116 = arith.addf %114, %115 : vector<2x32xf32>
    %117 = math.tanh %116 : vector<2x32xf32>
    %118 = arith.mulf %113, %117 : vector<2x32xf32>
    %119 = arith.truncf %118 : vector<2x32xf32> to vector<2x32xbf16>
    %cst_43 = arith.constant dense<0.000000e+00> : vector<2x128xf32>
    %120 = tpu.matmul %119, %17, %cst_43 {dimension_numbers = #tpu.dot_dimension_numbers<[1], [0], [0], [1], [0, 0, 1, 1], [], []>} : vector<2x32xbf16>, vector<32x128xbf16>, vector<2x128xf32> -> vector<2x128xf32>
    %121 = arith.addf %33, %120 : vector<2x128xf32>
    %122 = arith.negf %121 : vector<2x128xf32>
    %123 = math.exp %122 : vector<2x128xf32>
    %cst_44 = arith.constant 1.000000e+00 : f32
    %124 = vector.broadcast %cst_44 : f32 to vector<2x128xf32>
    %125 = arith.addf %124, %123 : vector<2x128xf32>
    %126 = arith.divf %124, %125 : vector<2x128xf32>
    %127 = math.tanh %121 : vector<2x128xf32>
    %128 = vector.extract_strided_slice %126 {offsets = [0, 0], sizes = [2, 32], strides = [1, 1]} : vector<2x128xf32> to vector<2x32xf32>
    %129 = vector.extract_strided_slice %126 {offsets = [0, 32], sizes = [2, 32], strides = [1, 1]} : vector<2x128xf32> to vector<2x32xf32>
    %130 = vector.extract_strided_slice %127 {offsets = [0, 64], sizes = [2, 32], strides = [1, 1]} : vector<2x128xf32> to vector<2x32xf32>
    %131 = vector.extract_strided_slice %126 {offsets = [0, 96], sizes = [2, 32], strides = [1, 1]} : vector<2x128xf32> to vector<2x32xf32>
    %132 = arith.mulf %129, %116 : vector<2x32xf32>
    %133 = arith.mulf %128, %130 : vector<2x32xf32>
    %134 = arith.addf %132, %133 : vector<2x32xf32>
    %135 = math.tanh %134 : vector<2x32xf32>
    %136 = arith.mulf %131, %135 : vector<2x32xf32>
    %137 = arith.truncf %136 : vector<2x32xf32> to vector<2x32xbf16>
    %cst_45 = arith.constant dense<0.000000e+00> : vector<2x128xf32>
    %138 = tpu.matmul %137, %17, %cst_45 {dimension_numbers = #tpu.dot_dimension_numbers<[1], [0], [0], [1], [0, 0, 1, 1], [], []>} : vector<2x32xbf16>, vector<32x128xbf16>, vector<2x128xf32> -> vector<2x128xf32>
    %139 = arith.addf %36, %138 : vector<2x128xf32>
    %140 = arith.negf %139 : vector<2x128xf32>
    %141 = math.exp %140 : vector<2x128xf32>
    %cst_46 = arith.constant 1.000000e+00 : f32
    %142 = vector.broadcast %cst_46 : f32 to vector<2x128xf32>
    %143 = arith.addf %142, %141 : vector<2x128xf32>
    %144 = arith.divf %142, %143 : vector<2x128xf32>
    %145 = math.tanh %139 : vector<2x128xf32>
    %146 = vector.extract_strided_slice %144 {offsets = [0, 0], sizes = [2, 32], strides = [1, 1]} : vector<2x128xf32> to vector<2x32xf32>
    %147 = vector.extract_strided_slice %144 {offsets = [0, 32], sizes = [2, 32], strides = [1, 1]} : vector<2x128xf32> to vector<2x32xf32>
    %148 = vector.extract_strided_slice %145 {offsets = [0, 64], sizes = [2, 32], strides = [1, 1]} : vector<2x128xf32> to vector<2x32xf32>
    %149 = vector.extract_strided_slice %144 {offsets = [0, 96], sizes = [2, 32], strides = [1, 1]} : vector<2x128xf32> to vector<2x32xf32>
    %150 = arith.mulf %147, %134 : vector<2x32xf32>
    %151 = arith.mulf %146, %148 : vector<2x32xf32>
    %152 = arith.addf %150, %151 : vector<2x32xf32>
    %153 = math.tanh %152 : vector<2x32xf32>
    %154 = arith.mulf %149, %153 : vector<2x32xf32>
    %155 = arith.truncf %154 : vector<2x32xf32> to vector<2x32xbf16>
    %cst_47 = arith.constant dense<0.000000e+00> : vector<2x128xf32>
    %156 = tpu.matmul %155, %17, %cst_47 {dimension_numbers = #tpu.dot_dimension_numbers<[1], [0], [0], [1], [0, 0, 1, 1], [], []>} : vector<2x32xbf16>, vector<32x128xbf16>, vector<2x128xf32> -> vector<2x128xf32>
    %157 = arith.addf %39, %156 : vector<2x128xf32>
    %158 = arith.negf %157 : vector<2x128xf32>
    %159 = math.exp %158 : vector<2x128xf32>
    %cst_48 = arith.constant 1.000000e+00 : f32
    %160 = vector.broadcast %cst_48 : f32 to vector<2x128xf32>
    %161 = arith.addf %160, %159 : vector<2x128xf32>
    %162 = arith.divf %160, %161 : vector<2x128xf32>
    %163 = math.tanh %157 : vector<2x128xf32>
    %164 = vector.extract_strided_slice %162 {offsets = [0, 0], sizes = [2, 32], strides = [1, 1]} : vector<2x128xf32> to vector<2x32xf32>
    %165 = vector.extract_strided_slice %162 {offsets = [0, 32], sizes = [2, 32], strides = [1, 1]} : vector<2x128xf32> to vector<2x32xf32>
    %166 = vector.extract_strided_slice %163 {offsets = [0, 64], sizes = [2, 32], strides = [1, 1]} : vector<2x128xf32> to vector<2x32xf32>
    %167 = vector.extract_strided_slice %162 {offsets = [0, 96], sizes = [2, 32], strides = [1, 1]} : vector<2x128xf32> to vector<2x32xf32>
    %168 = arith.mulf %165, %152 : vector<2x32xf32>
    %169 = arith.mulf %164, %166 : vector<2x32xf32>
    %170 = arith.addf %168, %169 : vector<2x32xf32>
    %171 = math.tanh %170 : vector<2x32xf32>
    %172 = arith.mulf %167, %171 : vector<2x32xf32>
    %173 = arith.truncf %172 : vector<2x32xf32> to vector<2x32xbf16>
    %cst_49 = arith.constant dense<0.000000e+00> : vector<2x128xf32>
    %174 = tpu.matmul %173, %17, %cst_49 {dimension_numbers = #tpu.dot_dimension_numbers<[1], [0], [0], [1], [0, 0, 1, 1], [], []>} : vector<2x32xbf16>, vector<32x128xbf16>, vector<2x128xf32> -> vector<2x128xf32>
    %175 = arith.addf %42, %174 : vector<2x128xf32>
    %176 = arith.negf %175 : vector<2x128xf32>
    %177 = math.exp %176 : vector<2x128xf32>
    %cst_50 = arith.constant 1.000000e+00 : f32
    %178 = vector.broadcast %cst_50 : f32 to vector<2x128xf32>
    %179 = arith.addf %178, %177 : vector<2x128xf32>
    %180 = arith.divf %178, %179 : vector<2x128xf32>
    %181 = math.tanh %175 : vector<2x128xf32>
    %182 = vector.extract_strided_slice %180 {offsets = [0, 0], sizes = [2, 32], strides = [1, 1]} : vector<2x128xf32> to vector<2x32xf32>
    %183 = vector.extract_strided_slice %180 {offsets = [0, 32], sizes = [2, 32], strides = [1, 1]} : vector<2x128xf32> to vector<2x32xf32>
    %184 = vector.extract_strided_slice %181 {offsets = [0, 64], sizes = [2, 32], strides = [1, 1]} : vector<2x128xf32> to vector<2x32xf32>
    %185 = vector.extract_strided_slice %180 {offsets = [0, 96], sizes = [2, 32], strides = [1, 1]} : vector<2x128xf32> to vector<2x32xf32>
    %186 = arith.mulf %183, %170 : vector<2x32xf32>
    %187 = arith.mulf %182, %184 : vector<2x32xf32>
    %188 = arith.addf %186, %187 : vector<2x32xf32>
    %189 = math.tanh %188 : vector<2x32xf32>
    %190 = arith.mulf %185, %189 : vector<2x32xf32>
    %c0_51 = arith.constant 0 : index
    %c0_52 = arith.constant 0 : index
    %c0_53 = arith.constant 0 : index
    %191 = vector.load %arg12[%c0_51, %c0_52, %c0_53] : memref<2x2x32xf32, #tpu.memory_space<vmem>>, vector<1x2x32xf32>
    %192 = vector.shape_cast %191 : vector<1x2x32xf32> to vector<2x32xf32>
    %193 = vector.shape_cast %190 : vector<2x32xf32> to vector<1x2x32xf32>
    tpu.vector_store %arg12[%c0_51, %c0_52, %c0_53], %193 {strides = array<i32>} : memref<2x2x32xf32, #tpu.memory_space<vmem>>, vector<1x2x32xf32>,
    %c0_54 = arith.constant 0 : index
    %c0_55 = arith.constant 0 : index
    %c0_56 = arith.constant 0 : index
    %194 = vector.load %arg13[%c0_54, %c0_55, %c0_56] : memref<2x2x32xf32, #tpu.memory_space<vmem>>, vector<1x2x32xf32>
    %195 = vector.shape_cast %194 : vector<1x2x32xf32> to vector<2x32xf32>
    %196 = vector.shape_cast %188 : vector<2x32xf32> to vector<1x2x32xf32>
    tpu.vector_store %arg13[%c0_54, %c0_55, %c0_56], %196 {strides = array<i32>} : memref<2x2x32xf32, #tpu.memory_space<vmem>>, vector<1x2x32xf32>,
    %197 = arith.truncf %64 : vector<2x32xf32> to vector<2x32xbf16>
    %198 = arith.truncf %82 : vector<2x32xf32> to vector<2x32xbf16>
    %199 = arith.truncf %100 : vector<2x32xf32> to vector<2x32xbf16>
    %200 = arith.truncf %118 : vector<2x32xf32> to vector<2x32xbf16>
    %201 = arith.truncf %136 : vector<2x32xf32> to vector<2x32xbf16>
    %202 = arith.truncf %154 : vector<2x32xf32> to vector<2x32xbf16>
    %203 = arith.truncf %172 : vector<2x32xf32> to vector<2x32xbf16>
    %204 = arith.truncf %190 : vector<2x32xf32> to vector<2x32xbf16>
    %c0_57 = arith.constant 0 : index
    %c0_58 = arith.constant 0 : index
    %205 = vector.load %arg6[%c0_57, %c0_58] : memref<32x128xbf16, #tpu.memory_space<vmem>>, vector<32x128xbf16>
    %c0_59 = arith.constant 0 : index
    %c0_60 = arith.constant 0 : index
    %206 = vector.load %arg7[%c0_59, %c0_60] : memref<32x128xbf16, #tpu.memory_space<vmem>>, vector<32x128xbf16>
    %c0_61 = arith.constant 0 : index
    %c0_62 = arith.constant 0 : index
    %207 = vector.load %arg8[%c0_61, %c0_62] : memref<1x128xf32, #tpu.memory_space<vmem>>, vector<1x128xf32>
    %cst_63 = arith.constant dense<0.000000e+00> : vector<2x128xf32>
    %208 = tpu.matmul %197, %205, %cst_63 {dimension_numbers = #tpu.dot_dimension_numbers<[1], [0], [0], [1], [0, 0, 1, 1], [], []>} : vector<2x32xbf16>, vector<32x128xbf16>, vector<2x128xf32> -> vector<2x128xf32>
    %209 = vector.broadcast %207 : vector<1x128xf32> to vector<2x128xf32>
    %210 = arith.addf %208, %209 : vector<2x128xf32>
    %cst_64 = arith.constant dense<0.000000e+00> : vector<2x128xf32>
    %211 = tpu.matmul %198, %205, %cst_64 {dimension_numbers = #tpu.dot_dimension_numbers<[1], [0], [0], [1], [0, 0, 1, 1], [], []>} : vector<2x32xbf16>, vector<32x128xbf16>, vector<2x128xf32> -> vector<2x128xf32>
    %212 = vector.broadcast %207 : vector<1x128xf32> to vector<2x128xf32>
    %213 = arith.addf %211, %212 : vector<2x128xf32>
    %cst_65 = arith.constant dense<0.000000e+00> : vector<2x128xf32>
    %214 = tpu.matmul %199, %205, %cst_65 {dimension_numbers = #tpu.dot_dimension_numbers<[1], [0], [0], [1], [0, 0, 1, 1], [], []>} : vector<2x32xbf16>, vector<32x128xbf16>, vector<2x128xf32> -> vector<2x128xf32>
    %215 = vector.broadcast %207 : vector<1x128xf32> to vector<2x128xf32>
    %216 = arith.addf %214, %215 : vector<2x128xf32>
    %cst_66 = arith.constant dense<0.000000e+00> : vector<2x128xf32>
    %217 = tpu.matmul %200, %205, %cst_66 {dimension_numbers = #tpu.dot_dimension_numbers<[1], [0], [0], [1], [0, 0, 1, 1], [], []>} : vector<2x32xbf16>, vector<32x128xbf16>, vector<2x128xf32> -> vector<2x128xf32>
    %218 = vector.broadcast %207 : vector<1x128xf32> to vector<2x128xf32>
    %219 = arith.addf %217, %218 : vector<2x128xf32>
    %cst_67 = arith.constant dense<0.000000e+00> : vector<2x128xf32>
    %220 = tpu.matmul %201, %205, %cst_67 {dimension_numbers = #tpu.dot_dimension_numbers<[1], [0], [0], [1], [0, 0, 1, 1], [], []>} : vector<2x32xbf16>, vector<32x128xbf16>, vector<2x128xf32> -> vector<2x128xf32>
    %221 = vector.broadcast %207 : vector<1x128xf32> to vector<2x128xf32>
    %222 = arith.addf %220, %221 : vector<2x128xf32>
    %cst_68 = arith.constant dense<0.000000e+00> : vector<2x128xf32>
    %223 = tpu.matmul %202, %205, %cst_68 {dimension_numbers = #tpu.dot_dimension_numbers<[1], [0], [0], [1], [0, 0, 1, 1], [], []>} : vector<2x32xbf16>, vector<32x128xbf16>, vector<2x128xf32> -> vector<2x128xf32>
    %224 = vector.broadcast %207 : vector<1x128xf32> to vector<2x128xf32>
    %225 = arith.addf %223, %224 : vector<2x128xf32>
    %cst_69 = arith.constant dense<0.000000e+00> : vector<2x128xf32>
    %226 = tpu.matmul %203, %205, %cst_69 {dimension_numbers = #tpu.dot_dimension_numbers<[1], [0], [0], [1], [0, 0, 1, 1], [], []>} : vector<2x32xbf16>, vector<32x128xbf16>, vector<2x128xf32> -> vector<2x128xf32>
    %227 = vector.broadcast %207 : vector<1x128xf32> to vector<2x128xf32>
    %228 = arith.addf %226, %227 : vector<2x128xf32>
    %cst_70 = arith.constant dense<0.000000e+00> : vector<2x128xf32>
    %229 = tpu.matmul %204, %205, %cst_70 {dimension_numbers = #tpu.dot_dimension_numbers<[1], [0], [0], [1], [0, 0, 1, 1], [], []>} : vector<2x32xbf16>, vector<32x128xbf16>, vector<2x128xf32> -> vector<2x128xf32>
    %230 = vector.broadcast %207 : vector<1x128xf32> to vector<2x128xf32>
    %231 = arith.addf %229, %230 : vector<2x128xf32>
    %c1_71 = arith.constant 1 : index
    %c0_72 = arith.constant 0 : index
    %c0_73 = arith.constant 0 : index
    %232 = vector.load %arg1[%c1_71, %c0_72, %c0_73] : memref<2x2x32xf32, #tpu.memory_space<vmem>>, vector<1x2x32xf32>
    %233 = vector.shape_cast %232 : vector<1x2x32xf32> to vector<2x32xf32>
    %c1_74 = arith.constant 1 : index
    %c0_75 = arith.constant 0 : index
    %c0_76 = arith.constant 0 : index
    %234 = vector.load %arg2[%c1_74, %c0_75, %c0_76] : memref<2x2x32xf32, #tpu.memory_space<vmem>>, vector<1x2x32xf32>
    %235 = vector.shape_cast %234 : vector<1x2x32xf32> to vector<2x32xf32>
    %236 = arith.truncf %233 : vector<2x32xf32> to vector<2x32xbf16>
    %cst_77 = arith.constant dense<0.000000e+00> : vector<2x128xf32>
    %237 = tpu.matmul %236, %206, %cst_77 {dimension_numbers = #tpu.dot_dimension_numbers<[1], [0], [0], [1], [0, 0, 1, 1], [], []>} : vector<2x32xbf16>, vector<32x128xbf16>, vector<2x128xf32> -> vector<2x128xf32>
    %238 = arith.addf %210, %237 : vector<2x128xf32>
    %239 = arith.negf %238 : vector<2x128xf32>
    %240 = math.exp %239 : vector<2x128xf32>
    %cst_78 = arith.constant 1.000000e+00 : f32
    %241 = vector.broadcast %cst_78 : f32 to vector<2x128xf32>
    %242 = arith.addf %241, %240 : vector<2x128xf32>
    %243 = arith.divf %241, %242 : vector<2x128xf32>
    %244 = math.tanh %238 : vector<2x128xf32>
    %245 = vector.extract_strided_slice %243 {offsets = [0, 0], sizes = [2, 32], strides = [1, 1]} : vector<2x128xf32> to vector<2x32xf32>
    %246 = vector.extract_strided_slice %243 {offsets = [0, 32], sizes = [2, 32], strides = [1, 1]} : vector<2x128xf32> to vector<2x32xf32>
    %247 = vector.extract_strided_slice %244 {offsets = [0, 64], sizes = [2, 32], strides = [1, 1]} : vector<2x128xf32> to vector<2x32xf32>
    %248 = vector.extract_strided_slice %243 {offsets = [0, 96], sizes = [2, 32], strides = [1, 1]} : vector<2x128xf32> to vector<2x32xf32>
    %249 = arith.mulf %246, %235 : vector<2x32xf32>
    %250 = arith.mulf %245, %247 : vector<2x32xf32>
    %251 = arith.addf %249, %250 : vector<2x32xf32>
    %252 = math.tanh %251 : vector<2x32xf32>
    %253 = arith.mulf %248, %252 : vector<2x32xf32>
    %254 = arith.truncf %253 : vector<2x32xf32> to vector<2x32xbf16>
    %cst_79 = arith.constant dense<0.000000e+00> : vector<2x128xf32>
    %255 = tpu.matmul %254, %206, %cst_79 {dimension_numbers = #tpu.dot_dimension_numbers<[1], [0], [0], [1], [0, 0, 1, 1], [], []>} : vector<2x32xbf16>, vector<32x128xbf16>, vector<2x128xf32> -> vector<2x128xf32>
    %256 = arith.addf %213, %255 : vector<2x128xf32>
    %257 = arith.negf %256 : vector<2x128xf32>
    %258 = math.exp %257 : vector<2x128xf32>
    %cst_80 = arith.constant 1.000000e+00 : f32
    %259 = vector.broadcast %cst_80 : f32 to vector<2x128xf32>
    %260 = arith.addf %259, %258 : vector<2x128xf32>
    %261 = arith.divf %259, %260 : vector<2x128xf32>
    %262 = math.tanh %256 : vector<2x128xf32>
    %263 = vector.extract_strided_slice %261 {offsets = [0, 0], sizes = [2, 32], strides = [1, 1]} : vector<2x128xf32> to vector<2x32xf32>
    %264 = vector.extract_strided_slice %261 {offsets = [0, 32], sizes = [2, 32], strides = [1, 1]} : vector<2x128xf32> to vector<2x32xf32>
    %265 = vector.extract_strided_slice %262 {offsets = [0, 64], sizes = [2, 32], strides = [1, 1]} : vector<2x128xf32> to vector<2x32xf32>
    %266 = vector.extract_strided_slice %261 {offsets = [0, 96], sizes = [2, 32], strides = [1, 1]} : vector<2x128xf32> to vector<2x32xf32>
    %267 = arith.mulf %264, %251 : vector<2x32xf32>
    %268 = arith.mulf %263, %265 : vector<2x32xf32>
    %269 = arith.addf %267, %268 : vector<2x32xf32>
    %270 = math.tanh %269 : vector<2x32xf32>
    %271 = arith.mulf %266, %270 : vector<2x32xf32>
    %272 = arith.truncf %271 : vector<2x32xf32> to vector<2x32xbf16>
    %cst_81 = arith.constant dense<0.000000e+00> : vector<2x128xf32>
    %273 = tpu.matmul %272, %206, %cst_81 {dimension_numbers = #tpu.dot_dimension_numbers<[1], [0], [0], [1], [0, 0, 1, 1], [], []>} : vector<2x32xbf16>, vector<32x128xbf16>, vector<2x128xf32> -> vector<2x128xf32>
    %274 = arith.addf %216, %273 : vector<2x128xf32>
    %275 = arith.negf %274 : vector<2x128xf32>
    %276 = math.exp %275 : vector<2x128xf32>
    %cst_82 = arith.constant 1.000000e+00 : f32
    %277 = vector.broadcast %cst_82 : f32 to vector<2x128xf32>
    %278 = arith.addf %277, %276 : vector<2x128xf32>
    %279 = arith.divf %277, %278 : vector<2x128xf32>
    %280 = math.tanh %274 : vector<2x128xf32>
    %281 = vector.extract_strided_slice %279 {offsets = [0, 0], sizes = [2, 32], strides = [1, 1]} : vector<2x128xf32> to vector<2x32xf32>
    %282 = vector.extract_strided_slice %279 {offsets = [0, 32], sizes = [2, 32], strides = [1, 1]} : vector<2x128xf32> to vector<2x32xf32>
    %283 = vector.extract_strided_slice %280 {offsets = [0, 64], sizes = [2, 32], strides = [1, 1]} : vector<2x128xf32> to vector<2x32xf32>
    %284 = vector.extract_strided_slice %279 {offsets = [0, 96], sizes = [2, 32], strides = [1, 1]} : vector<2x128xf32> to vector<2x32xf32>
    %285 = arith.mulf %282, %269 : vector<2x32xf32>
    %286 = arith.mulf %281, %283 : vector<2x32xf32>
    %287 = arith.addf %285, %286 : vector<2x32xf32>
    %288 = math.tanh %287 : vector<2x32xf32>
    %289 = arith.mulf %284, %288 : vector<2x32xf32>
    %290 = arith.truncf %289 : vector<2x32xf32> to vector<2x32xbf16>
    %cst_83 = arith.constant dense<0.000000e+00> : vector<2x128xf32>
    %291 = tpu.matmul %290, %206, %cst_83 {dimension_numbers = #tpu.dot_dimension_numbers<[1], [0], [0], [1], [0, 0, 1, 1], [], []>} : vector<2x32xbf16>, vector<32x128xbf16>, vector<2x128xf32> -> vector<2x128xf32>
    %292 = arith.addf %219, %291 : vector<2x128xf32>
    %293 = arith.negf %292 : vector<2x128xf32>
    %294 = math.exp %293 : vector<2x128xf32>
    %cst_84 = arith.constant 1.000000e+00 : f32
    %295 = vector.broadcast %cst_84 : f32 to vector<2x128xf32>
    %296 = arith.addf %295, %294 : vector<2x128xf32>
    %297 = arith.divf %295, %296 : vector<2x128xf32>
    %298 = math.tanh %292 : vector<2x128xf32>
    %299 = vector.extract_strided_slice %297 {offsets = [0, 0], sizes = [2, 32], strides = [1, 1]} : vector<2x128xf32> to vector<2x32xf32>
    %300 = vector.extract_strided_slice %297 {offsets = [0, 32], sizes = [2, 32], strides = [1, 1]} : vector<2x128xf32> to vector<2x32xf32>
    %301 = vector.extract_strided_slice %298 {offsets = [0, 64], sizes = [2, 32], strides = [1, 1]} : vector<2x128xf32> to vector<2x32xf32>
    %302 = vector.extract_strided_slice %297 {offsets = [0, 96], sizes = [2, 32], strides = [1, 1]} : vector<2x128xf32> to vector<2x32xf32>
    %303 = arith.mulf %300, %287 : vector<2x32xf32>
    %304 = arith.mulf %299, %301 : vector<2x32xf32>
    %305 = arith.addf %303, %304 : vector<2x32xf32>
    %306 = math.tanh %305 : vector<2x32xf32>
    %307 = arith.mulf %302, %306 : vector<2x32xf32>
    %308 = arith.truncf %307 : vector<2x32xf32> to vector<2x32xbf16>
    %cst_85 = arith.constant dense<0.000000e+00> : vector<2x128xf32>
    %309 = tpu.matmul %308, %206, %cst_85 {dimension_numbers = #tpu.dot_dimension_numbers<[1], [0], [0], [1], [0, 0, 1, 1], [], []>} : vector<2x32xbf16>, vector<32x128xbf16>, vector<2x128xf32> -> vector<2x128xf32>
    %310 = arith.addf %222, %309 : vector<2x128xf32>
    %311 = arith.negf %310 : vector<2x128xf32>
    %312 = math.exp %311 : vector<2x128xf32>
    %cst_86 = arith.constant 1.000000e+00 : f32
    %313 = vector.broadcast %cst_86 : f32 to vector<2x128xf32>
    %314 = arith.addf %313, %312 : vector<2x128xf32>
    %315 = arith.divf %313, %314 : vector<2x128xf32>
    %316 = math.tanh %310 : vector<2x128xf32>
    %317 = vector.extract_strided_slice %315 {offsets = [0, 0], sizes = [2, 32], strides = [1, 1]} : vector<2x128xf32> to vector<2x32xf32>
    %318 = vector.extract_strided_slice %315 {offsets = [0, 32], sizes = [2, 32], strides = [1, 1]} : vector<2x128xf32> to vector<2x32xf32>
    %319 = vector.extract_strided_slice %316 {offsets = [0, 64], sizes = [2, 32], strides = [1, 1]} : vector<2x128xf32> to vector<2x32xf32>
    %320 = vector.extract_strided_slice %315 {offsets = [0, 96], sizes = [2, 32], strides = [1, 1]} : vector<2x128xf32> to vector<2x32xf32>
    %321 = arith.mulf %318, %305 : vector<2x32xf32>
    %322 = arith.mulf %317, %319 : vector<2x32xf32>
    %323 = arith.addf %321, %322 : vector<2x32xf32>
    %324 = math.tanh %323 : vector<2x32xf32>
    %325 = arith.mulf %320, %324 : vector<2x32xf32>
    %326 = arith.truncf %325 : vector<2x32xf32> to vector<2x32xbf16>
    %cst_87 = arith.constant dense<0.000000e+00> : vector<2x128xf32>
    %327 = tpu.matmul %326, %206, %cst_87 {dimension_numbers = #tpu.dot_dimension_numbers<[1], [0], [0], [1], [0, 0, 1, 1], [], []>} : vector<2x32xbf16>, vector<32x128xbf16>, vector<2x128xf32> -> vector<2x128xf32>
    %328 = arith.addf %225, %327 : vector<2x128xf32>
    %329 = arith.negf %328 : vector<2x128xf32>
    %330 = math.exp %329 : vector<2x128xf32>
    %cst_88 = arith.constant 1.000000e+00 : f32
    %331 = vector.broadcast %cst_88 : f32 to vector<2x128xf32>
    %332 = arith.addf %331, %330 : vector<2x128xf32>
    %333 = arith.divf %331, %332 : vector<2x128xf32>
    %334 = math.tanh %328 : vector<2x128xf32>
    %335 = vector.extract_strided_slice %333 {offsets = [0, 0], sizes = [2, 32], strides = [1, 1]} : vector<2x128xf32> to vector<2x32xf32>
    %336 = vector.extract_strided_slice %333 {offsets = [0, 32], sizes = [2, 32], strides = [1, 1]} : vector<2x128xf32> to vector<2x32xf32>
    %337 = vector.extract_strided_slice %334 {offsets = [0, 64], sizes = [2, 32], strides = [1, 1]} : vector<2x128xf32> to vector<2x32xf32>
    %338 = vector.extract_strided_slice %333 {offsets = [0, 96], sizes = [2, 32], strides = [1, 1]} : vector<2x128xf32> to vector<2x32xf32>
    %339 = arith.mulf %336, %323 : vector<2x32xf32>
    %340 = arith.mulf %335, %337 : vector<2x32xf32>
    %341 = arith.addf %339, %340 : vector<2x32xf32>
    %342 = math.tanh %341 : vector<2x32xf32>
    %343 = arith.mulf %338, %342 : vector<2x32xf32>
    %344 = arith.truncf %343 : vector<2x32xf32> to vector<2x32xbf16>
    %cst_89 = arith.constant dense<0.000000e+00> : vector<2x128xf32>
    %345 = tpu.matmul %344, %206, %cst_89 {dimension_numbers = #tpu.dot_dimension_numbers<[1], [0], [0], [1], [0, 0, 1, 1], [], []>} : vector<2x32xbf16>, vector<32x128xbf16>, vector<2x128xf32> -> vector<2x128xf32>
    %346 = arith.addf %228, %345 : vector<2x128xf32>
    %347 = arith.negf %346 : vector<2x128xf32>
    %348 = math.exp %347 : vector<2x128xf32>
    %cst_90 = arith.constant 1.000000e+00 : f32
    %349 = vector.broadcast %cst_90 : f32 to vector<2x128xf32>
    %350 = arith.addf %349, %348 : vector<2x128xf32>
    %351 = arith.divf %349, %350 : vector<2x128xf32>
    %352 = math.tanh %346 : vector<2x128xf32>
    %353 = vector.extract_strided_slice %351 {offsets = [0, 0], sizes = [2, 32], strides = [1, 1]} : vector<2x128xf32> to vector<2x32xf32>
    %354 = vector.extract_strided_slice %351 {offsets = [0, 32], sizes = [2, 32], strides = [1, 1]} : vector<2x128xf32> to vector<2x32xf32>
    %355 = vector.extract_strided_slice %352 {offsets = [0, 64], sizes = [2, 32], strides = [1, 1]} : vector<2x128xf32> to vector<2x32xf32>
    %356 = vector.extract_strided_slice %351 {offsets = [0, 96], sizes = [2, 32], strides = [1, 1]} : vector<2x128xf32> to vector<2x32xf32>
    %357 = arith.mulf %354, %341 : vector<2x32xf32>
    %358 = arith.mulf %353, %355 : vector<2x32xf32>
    %359 = arith.addf %357, %358 : vector<2x32xf32>
    %360 = math.tanh %359 : vector<2x32xf32>
    %361 = arith.mulf %356, %360 : vector<2x32xf32>
    %362 = arith.truncf %361 : vector<2x32xf32> to vector<2x32xbf16>
    %cst_91 = arith.constant dense<0.000000e+00> : vector<2x128xf32>
    %363 = tpu.matmul %362, %206, %cst_91 {dimension_numbers = #tpu.dot_dimension_numbers<[1], [0], [0], [1], [0, 0, 1, 1], [], []>} : vector<2x32xbf16>, vector<32x128xbf16>, vector<2x128xf32> -> vector<2x128xf32>
    %364 = arith.addf %231, %363 : vector<2x128xf32>
    %365 = arith.negf %364 : vector<2x128xf32>
    %366 = math.exp %365 : vector<2x128xf32>
    %cst_92 = arith.constant 1.000000e+00 : f32
    %367 = vector.broadcast %cst_92 : f32 to vector<2x128xf32>
    %368 = arith.addf %367, %366 : vector<2x128xf32>
    %369 = arith.divf %367, %368 : vector<2x128xf32>
    %370 = math.tanh %364 : vector<2x128xf32>
    %371 = vector.extract_strided_slice %369 {offsets = [0, 0], sizes = [2, 32], strides = [1, 1]} : vector<2x128xf32> to vector<2x32xf32>
    %372 = vector.extract_strided_slice %369 {offsets = [0, 32], sizes = [2, 32], strides = [1, 1]} : vector<2x128xf32> to vector<2x32xf32>
    %373 = vector.extract_strided_slice %370 {offsets = [0, 64], sizes = [2, 32], strides = [1, 1]} : vector<2x128xf32> to vector<2x32xf32>
    %374 = vector.extract_strided_slice %369 {offsets = [0, 96], sizes = [2, 32], strides = [1, 1]} : vector<2x128xf32> to vector<2x32xf32>
    %375 = arith.mulf %372, %359 : vector<2x32xf32>
    %376 = arith.mulf %371, %373 : vector<2x32xf32>
    %377 = arith.addf %375, %376 : vector<2x32xf32>
    %378 = math.tanh %377 : vector<2x32xf32>
    %379 = arith.mulf %374, %378 : vector<2x32xf32>
    %c1_93 = arith.constant 1 : index
    %c0_94 = arith.constant 0 : index
    %c0_95 = arith.constant 0 : index
    %380 = vector.load %arg12[%c1_93, %c0_94, %c0_95] : memref<2x2x32xf32, #tpu.memory_space<vmem>>, vector<1x2x32xf32>
    %381 = vector.shape_cast %380 : vector<1x2x32xf32> to vector<2x32xf32>
    %382 = vector.shape_cast %379 : vector<2x32xf32> to vector<1x2x32xf32>
    tpu.vector_store %arg12[%c1_93, %c0_94, %c0_95], %382 {strides = array<i32>} : memref<2x2x32xf32, #tpu.memory_space<vmem>>, vector<1x2x32xf32>,
    %c1_96 = arith.constant 1 : index
    %c0_97 = arith.constant 0 : index
    %c0_98 = arith.constant 0 : index
    %383 = vector.load %arg13[%c1_96, %c0_97, %c0_98] : memref<2x2x32xf32, #tpu.memory_space<vmem>>, vector<1x2x32xf32>
    %384 = vector.shape_cast %383 : vector<1x2x32xf32> to vector<2x32xf32>
    %385 = vector.shape_cast %377 : vector<2x32xf32> to vector<1x2x32xf32>
    tpu.vector_store %arg13[%c1_96, %c0_97, %c0_98], %385 {strides = array<i32>} : memref<2x2x32xf32, #tpu.memory_space<vmem>>, vector<1x2x32xf32>,
    %c0_99 = arith.constant 0 : index
    %c0_100 = arith.constant 0 : index
    %386 = vector.load %arg9[%c0_99, %c0_100] : memref<8x32xf32, #tpu.memory_space<vmem>>, vector<8x32xf32>
    %387 = vector.extract_strided_slice %386 {offsets = [0, 0], sizes = [1, 32], strides = [1, 1]} : vector<8x32xf32> to vector<1x32xf32>
    %388 = vector.broadcast %387 : vector<1x32xf32> to vector<2x32xf32>
    %389 = arith.mulf %253, %388 : vector<2x32xf32>
    %390 = vector.extract_strided_slice %386 {offsets = [1, 0], sizes = [1, 32], strides = [1, 1]} : vector<8x32xf32> to vector<1x32xf32>
    %391 = vector.broadcast %390 : vector<1x32xf32> to vector<2x32xf32>
    %392 = arith.mulf %271, %391 : vector<2x32xf32>
    %393 = arith.addf %389, %392 : vector<2x32xf32>
    %394 = vector.extract_strided_slice %386 {offsets = [2, 0], sizes = [1, 32], strides = [1, 1]} : vector<8x32xf32> to vector<1x32xf32>
    %395 = vector.broadcast %394 : vector<1x32xf32> to vector<2x32xf32>
    %396 = arith.mulf %289, %395 : vector<2x32xf32>
    %397 = arith.addf %393, %396 : vector<2x32xf32>
    %398 = vector.extract_strided_slice %386 {offsets = [3, 0], sizes = [1, 32], strides = [1, 1]} : vector<8x32xf32> to vector<1x32xf32>
    %399 = vector.broadcast %398 : vector<1x32xf32> to vector<2x32xf32>
    %400 = arith.mulf %307, %399 : vector<2x32xf32>
    %401 = arith.addf %397, %400 : vector<2x32xf32>
    %402 = vector.extract_strided_slice %386 {offsets = [4, 0], sizes = [1, 32], strides = [1, 1]} : vector<8x32xf32> to vector<1x32xf32>
    %403 = vector.broadcast %402 : vector<1x32xf32> to vector<2x32xf32>
    %404 = arith.mulf %325, %403 : vector<2x32xf32>
    %405 = arith.addf %401, %404 : vector<2x32xf32>
    %406 = vector.extract_strided_slice %386 {offsets = [5, 0], sizes = [1, 32], strides = [1, 1]} : vector<8x32xf32> to vector<1x32xf32>
    %407 = vector.broadcast %406 : vector<1x32xf32> to vector<2x32xf32>
    %408 = arith.mulf %343, %407 : vector<2x32xf32>
    %409 = arith.addf %405, %408 : vector<2x32xf32>
    %410 = vector.extract_strided_slice %386 {offsets = [6, 0], sizes = [1, 32], strides = [1, 1]} : vector<8x32xf32> to vector<1x32xf32>
    %411 = vector.broadcast %410 : vector<1x32xf32> to vector<2x32xf32>
    %412 = arith.mulf %361, %411 : vector<2x32xf32>
    %413 = arith.addf %409, %412 : vector<2x32xf32>
    %414 = vector.extract_strided_slice %386 {offsets = [7, 0], sizes = [1, 32], strides = [1, 1]} : vector<8x32xf32> to vector<1x32xf32>
    %415 = vector.broadcast %414 : vector<1x32xf32> to vector<2x32xf32>
    %416 = arith.mulf %379, %415 : vector<2x32xf32>
    %417 = arith.addf %413, %416 : vector<2x32xf32>
    %cst_101 = arith.constant dense<0.000000e+00> : vector<2xf32>
    %418 = vector.multi_reduction <add>, %417, %cst_101 [1] : vector<2x32xf32> to vector<2xf32>
    %419 = vector.shape_cast %418 : vector<2xf32> to vector<2x1xf32>
    %c0_102 = arith.constant 0 : index
    %c0_103 = arith.constant 0 : index
    %420 = vector.load %arg10[%c0_102, %c0_103] : memref<1x1xf32, #tpu.memory_space<vmem>>, vector<1x1xf32>
    %421 = vector.broadcast %420 : vector<1x1xf32> to vector<2x1xf32>
    %422 = arith.addf %419, %421 : vector<2x1xf32>
    %c0_104 = arith.constant 0 : index
    %c0_105 = arith.constant 0 : index
    %423 = vector.load %arg11[%c0_104, %c0_105] : memref<2x1xf32, #tpu.memory_space<vmem>>, vector<2x1xf32>
    tpu.vector_store %arg11[%c0_104, %c0_105], %422 {strides = array<i32>} : memref<2x1xf32, #tpu.memory_space<vmem>>, vector<2x1xf32>,
    return
  }
}

</mosaic_0001>

<bundles_post_ra>
// kernel: stock_lstm_forward.1
= control target key start
LH: loop header
LB: loop body
LE: loop exit
PB: predicated region body
PF: predicated region fallthrough
CT: control target
= control target key end

     0   :  { %s3349_s0 = inlined_call_operand.vmem [shape: bf16[8,2,4], index: 0, kind: input, shape index: {}]   ;;  %s3350_s1 = inlined_call_operand.vmem [shape: f32[2,2,32], index: 1, kind: input, shape index: {}]   ;;  %s3351_s2 = inlined_call_operand.vmem [shape: f32[2,2,32], index: 2, kind: input, shape index: {}]   ;;  %s3352_s3 = inlined_call_operand.vmem [shape: bf16[4,128], index: 3, kind: input, shape index: {}]   ;;  %s3353_s4 = inlined_call_operand.vmem [shape: bf16[32,128], index: 4, kind: input, shape index: {}]   ;;  %s3354_s5 = inlined_call_operand.hbm [shape: f32[1,128], index: 5, kind: input, shape index: {}]   ;;  %s3355_s6 = inlined_call_operand.vmem [shape: bf16[32,128], index: 6, kind: input, shape index: {}]   ;;  %s3356_s7 = inlined_call_operand.vmem [shape: bf16[32,128], index: 7, kind: input, shape index: {}]   ;;  %s3357_s8 = inlined_call_operand.vmem [shape: f32[1,128], index: 8, kind: input, shape index: {}]   ;;  %s3358_s9 = inlined_call_operand.hbm [shape: f32[8,32], index: 9, kind: input, shape index: {}]   ;;  %s3359_s10 = inlined_call_operand.<no memory space> [shape: f32[1,1], index: 10, kind: input, shape index: {}]   ;;  %s3360_s11 = inlined_call_operand.vmem [shape: f32[2,1], index: 11, kind: output, shape index: {0}]   ;;  %s3361_s12 = inlined_call_operand.vmem [shape: f32[2,2,32], index: 12, kind: output, shape index: {1}]   ;;  %s3362_s13 = inlined_call_operand.vmem [shape: f32[2,2,32], index: 13, kind: output, shape index: {2}]  }
   0x1   :  { %v19_v0 = vstv %s3359_s10 }
   0x2   :  { %20 = vst [vmem:[#allocation2] sm:$0x1] %v19_v0 }
   0x3   :  { %21 = vsyncpa [#allocation4], 0 }
   0x4   :  { %22 = vsyncpa [#allocation6], 0  ;;  %s2782_s27 = smov [#allocation3]   ;;  %s2783_s29 = smov [#allocation5]  }
   0x5   :  { %s39_s28 = sshll.u32 %s2782_s27, 4  ;;  %s55_s30 = sshll.u32 %s2783_s29, 4  ;;  %s40_s28 = int_to_ptr.vmem [resolvable:$true] %s39_s28  ;;  %s56_s30 = int_to_ptr.vmem [resolvable:$true] %s55_s30 }
   0x6   :  { %s2734_s16 = scalar_lea.hbm %s3354_s5, 16 }
   0x7   :  { %p2735_p0 = scmp.ne.s32.totalorder %s3354_s5, %s2734_s16  ;;  %p2738_p1 = scmp.lt.u32.totalorder %s2734_s16, %s3354_s5 }
   0x9   :  { %p2740_p2 = pnand %p2738_p1, %p2735_p0 }
   0xb   :  { %2743 = shalt.err (!%p2740_p2)
}
   0xc   :  { %s2744_s10 = scalar_lea.vmem %s40_s28, 16  ;;  %s2748_s21 = scalar_lea.vmem %s40_s28, 32 }
   0xd   :  { %p2745_p3 = scmp.ne.s32.totalorder %s40_s28, %s2744_s10  ;;  %p2749_p4 = scmp.lt.s32.totalorder %s40_s28, %s40_s28 }
   0xe   :  { %p2750_p5 = scmp.lt.s32.totalorder %s2748_s21, %s2744_s10 }
  0x10   :  { %p2751_p6 = por %p2750_p5, %p2749_p4 }
  0x12   :  { %p2752_p7 = pnand %p2751_p6, %p2745_p3 }
  0x14   :  { %2755 = shalt.err (!%p2752_p7)
}
  0x15   :  { %42 = dma.hbm_to_vmem [thread:$0]  %s3354_s5, 16, %s40_s28, [#allocation4]  }
  0x16   :  { %s2756_s26 = scalar_lea.hbm %s3358_s9, 128 }
  0x17   :  { %p2757_p8 = scmp.ne.s32.totalorder %s3358_s9, %s2756_s26  ;;  %p2760_p9 = scmp.lt.u32.totalorder %s2756_s26, %s3358_s9 }
  0x19   :  { %p2762_p10 = pnand %p2760_p9, %p2757_p8 }
  0x1b   :  { %2765 = shalt.err (!%p2762_p10)
}
  0x1c   :  { %s2766_s16 = scalar_lea.vmem %s56_s30, 128  ;;  %p2771_p12 = scmp.lt.s32.totalorder %s56_s30, %s56_s30 }
  0x1d   :  { %p2767_p11 = scmp.ne.s32.totalorder %s56_s30, %s2766_s16  ;;  %p2772_p13 = scmp.lt.s32.totalorder %s2766_s16, %s2766_s16 }
  0x1f   :  { %p2773_p0 = por %p2772_p13, %p2771_p12 }
  0x21   :  { %p2774_p1 = pnand %p2773_p0, %p2767_p11 }
  0x23   :  { %2777 = shalt.err (!%p2774_p1)
}
  0x24   :  { %58 = dma.hbm_to_vmem [thread:$0]  %s3358_s9, 128, %s56_s30, [#allocation6]  }
  0x25   :  { %2778 = dma.done.wait [#allocation4], 16  }
  0x26   :  { %2779 = vsyncadd [#allocation4], 4294967280 }
  0x27   :  { %2780 = dma.done.wait [#allocation6], 128  }
  0x28   :  { %2781 = vsyncadd [#allocation6], 4294967168  ;;  %v2784_v1 = vmov 0.0   ;;  %vm2785_vm0 = vmmov 0   ;;  %vm99_vm1 = vcmask 1041408   ;;  %vm95_vm2 = vcmask 31744  }
  0x29   :  { %2273 = vmatprep.subr.bf16.mxu0 %v2784_v1  ;;  %2275 = vmatprep.mubr.msk.bf16.mxu0 %vm2785_vm0, %v2784_v1  ;;  %v83_v2 = vld [vmem:[%s3352_s3] sm:$0x3]  ;;  %v2118_v5 = vld [vmem:[%s3349_s0 + $0x2] sm:$0x1]  ;;  %v2120_v6 = vld [vmem:[%s3349_s0 + $0x4] sm:$0x1] }
  0x2a   :  { %2279 = vmatprep.subr.bf16.mxu1 %v2784_v1  ;;  %2281 = vmatprep.mubr.msk.bf16.mxu1 %vm2785_vm0, %v2784_v1  ;;  %v2895_v3 = vsel %vm99_vm1, %v83_v2, 0  ;;  %v68_v4 = vld [vmem:[%s3349_s0] sm:$0x1]  ;;  %v2122_v7 = vld [vmem:[%s3349_s0 + $0x6] sm:$0x1]  ;;  %v2938_v9 = vld [vmem:[%s3353_s4 + $0x8] sm:$0xff]  }
  0x2b   :  { %2274 = vmatpush3.bf16.msra.mxu0 %v2895_v3  ;;  %2280 = vmatpush3.bf16.msra.mxu1 %v2895_v3  ;;  %v2931_v8 = vld [vmem:[%s3353_s4] sm:$0xff]   ;;  %vm459_vm3 = vcmask 261120   ;;  %s2786_s4 = smov 64   ;;  %s2787_s16 = smov 32   ;;  %vm1040_vm4 = vcmask 254976   ;;  %vm2101_vm5 = vcmask 1024  }
  0x2c   :  { %2285 = vmatprep.subr.bf16.mxu0 %v2784_v1  ;;  %2291 = vmatprep.subr.bf16.mxu1 %v2784_v1  ;;  %v444_v10 = vld [vmem:[%s3350_s1] sm:$0x3]  ;;  %v2119_v31 = vld [vmem:[%s3349_s0 + $0x3] sm:$0x1]  ;;  %v2121_v33 = vld [vmem:[%s3349_s0 + $0x5] sm:$0x1] }
  0x2d   :  { %v446_v11 = vpack.c.bf16 %v444_v10, %v444_v10  ;;  %v2955_v12 = vld [vmem:[#allocation3] ss:$0 sm:$0xff]  ;;  %v2123_v34 = vld [vmem:[%s3349_s0 + $0x7] sm:$0x1] }
  0x2e   :  { %2276 = vmatmul.mubr.msk.bf16.vlgmr.msra.gmra.mrb[0].mxu0 %vm95_vm2, %v68_v4  ;;  %v445_v19 = vld [vmem:[%s3351_s2] sm:$0x3] }
  0x2f   :  { %2286 = vmatpush3.bf16.msra.mxu0 %v2895_v3  ;;  %2287 = vmatprep.mubr.msk.bf16.mxu0 %vm2785_vm0, %v2784_v1  ;;  %v2117_v30 = vld [vmem:[%s3349_s0 + $0x1] sm:$0x1] }
  0x30   :  { %2297 = vmatprep.subr.bf16.mxu0 %v2784_v1  ;;  %2282 = vmatmul.mubr.msk.bf16.vlgmr.msra.gmra.mrb[0].mxu1 %vm95_vm2, %v2117_v30 }
  0x31   :  { %2292 = vmatpush3.bf16.msra.mxu1 %v2895_v3  ;;  %2293 = vmatprep.mubr.msk.bf16.mxu1 %vm2785_vm0, %v2784_v1 }
  0x32   :  { %2303 = vmatprep.subr.bf16.mxu1 %v2784_v1 }
  0x36   :  { %2288 = vmatmul.mubr.msk.bf16.vlgmr.msra.gmra.mrb[4].mxu0 %vm95_vm2, %v2118_v5 }
  0x37   :  { %2298 = vmatpush3.bf16.msra.mxu0 %v2895_v3  ;;  %2299 = vmatprep.mubr.msk.bf16.mxu0 %vm2785_vm0, %v2784_v1 }
  0x38   :  { %2309 = vmatprep.subr.bf16.mxu0 %v2784_v1  ;;  %2294 = vmatmul.mubr.msk.bf16.vlgmr.msra.gmra.mrb[4].mxu1 %vm95_vm2, %v2119_v31 }
  0x39   :  { %2304 = vmatpush3.bf16.msra.mxu1 %v2895_v3  ;;  %2305 = vmatprep.mubr.msk.bf16.mxu1 %vm2785_vm0, %v2784_v1 }
  0x3a   :  { %2315 = vmatprep.subr.bf16.mxu1 %v2784_v1 }
  0x3e   :  { %2300 = vmatmul.mubr.msk.bf16.vlgmr.msra.gmra.mrb[8].mxu0 %vm95_vm2, %v2120_v6 }
  0x3f   :  { %2310 = vmatpush3.bf16.msra.mxu0 %v2895_v3  ;;  %2311 = vmatprep.mubr.msk.bf16.mxu0 %vm2785_vm0, %v2784_v1 }
  0x40   :  { %2321 = vmatprep.subr.bf16.mxu0 %v2784_v1  ;;  %2306 = vmatmul.mubr.msk.bf16.vlgmr.msra.gmra.mrb[8].mxu1 %vm95_vm2, %v2121_v33 }
  0x41   :  { %2316 = vmatpush3.bf16.msra.mxu1 %v2895_v3  ;;  %2317 = vmatprep.mubr.msk.bf16.mxu1 %vm2785_vm0, %v2784_v1 }
  0x42   :  { %2329 = vmatprep.subr.bf16.mxu1 %v2784_v1 }
  0x46   :  { %2312 = vmatmul.mubr.msk.bf16.vlgmr.msra.gmra.mrb[12].mxu0 %vm95_vm2, %v2122_v7 }
  0x47   :  { %2322 = vmatpush3.bf16.msra.mxu0 %v2931_v8  ;;  %2325 = vmatprep.mubr.msk.bf16.mxu0 %vm2785_vm0, %v2784_v1 }
  0x48   :  { %2323 = vmatprep.subr.bf16.mxu0 %v2784_v1  ;;  %2318 = vmatmul.mubr.msk.bf16.vlgmr.msra.gmra.mrb[12].mxu1 %vm95_vm2, %v2123_v34 }
  0x49   :  { %2330 = vmatpush3.bf16.msra.mxu1 %v2931_v8  ;;  %2333 = vmatprep.mubr.msk.bf16.mxu1 %vm2785_vm0, %v2784_v1 }
  0x4a   :  { %2331 = vmatprep.subr.bf16.mxu1 %v2784_v1 }
  0x4b   :  { %2324 = vmatpush3.bf16.msra.mxu0 %v2938_v9 }
  0x4c   :  { %2337 = vmatprep.subr.bf16.mxu0 %v2784_v1 }
  0x4d   :  { %2332 = vmatpush3.bf16.msra.mxu1 %v2938_v9 }
  0x4e   :  { %2326 = vmatmul.mubr.msk.bf16.vlgmr.msra.gmra.mrb[0].mxu0 %vm459_vm3, %v446_v11  ;;  %2345 = vmatprep.subr.bf16.mxu1 %v2784_v1 }
  0x4f   :  { %2338 = vmatpush3.bf16.msra.mxu0 %v2931_v8  ;;  %2341 = vmatprep.mubr.msk.bf16.mxu0 %vm2785_vm0, %v2784_v1 }
  0x50   :  { %2339 = vmatprep.subr.bf16.mxu0 %v2784_v1 }
  0x53   :  { %2340 = vmatpush3.bf16.msra.mxu0 %v2938_v9 }
  0x54   :  { %2353 = vmatprep.subr.bf16.mxu0 %v2784_v1 }
 0x121   :  { %v497_v13 = vpop.f32.mrb[0].mxu0 }
 0x122   :  { %v2513_v14 = vadd.f32 %v2955_v12, %v497_v13  ;;  %v2327_v15 = vpop.f32.mrb[1].mxu0 }
 0x123   :  { %v500_v16 = vpop.f32.mrb[2].mxu0 }
 0x124   :  { %2606 = vtanh.f32 %v2513_v14  ;;  %v2328_v17 = vpop.f32.mrb[3].mxu0  ;;  %v2136_v20 = vmul.f32 -1.442695, %v2513_v14 }
 0x126   :  { %2608 = vpow2.f32 %v2136_v20 }
 0x12e   :  { %v2607_v18 = vpop.eup %2606 }
 0x12f   :  { %517 = vrot.lane.b32.xlu0 %v2607_v18, %s2786_s4 }
 0x130   :  { %v2609_v21 = vpop.eup %2608 }
 0x131   :  { %v507_v22 = vadd.f32 1.0, %v2609_v21 }
 0x133   :  { %512 = vrot.lane.b32.xlu0 %v445_v19, %s2787_s16  ;;  %2610 = vrcp.f32 %v507_v22 }
 0x13d   :  { %v2611_v23 = vpop.eup %2610 }
 0x1a1   :  { %v518_v24 = vpop.permute.xlu0 %517 }
 0x1a2   :  { %v520_v25 = vmul.f32 %v2611_v23, %v518_v24 }
 0x1a4   :  { %522 = vrot.lane.b32.xlu1 %v520_v25, %s2787_s16 }
 0x1a5   :  { %v513_v26 = vpop.permute.xlu0 %512 }
 0x1a6   :  { %v515_v27 = vmul.f32 %v2611_v23, %v513_v26 }
 0x216   :  { %v523_v28 = vpop.permute.xlu1 %522 }
 0x217   :  { %v525_v29 = vadd.f32 %v523_v28, %v515_v27 }
 0x219   :  { %2612 = vtanh.f32 %v525_v29 }
 0x223   :  { %v2613_v32 = vpop.eup %2612 }
 0x224   :  { %528 = vrot.lane.b32.xlu1 %v2613_v32, %s2786_s4 }
 0x296   :  { %v529_v35 = vpop.permute.xlu1 %528 }
 0x297   :  { %v531_v36 = vmul.f32 %v2611_v23, %v529_v35 }
 0x299   :  { %v532_v37 = vpack.c.bf16 %v531_v36, %v531_v36 }
 0x29b   :  { %534 = vrot.lane.b32.xlu0 %v532_v37, %s2787_s16 }
 0x30d   :  { %v3000_v38 = vpop.permute.xlu0 %534 }
 0x30e   :  { %2334 = vmatmul.mubr.msk.bf16.vlgmr.msra.gmra.mrb[0].mxu1 %vm459_vm3, %v3000_v38 }
 0x30f   :  { %2346 = vmatpush3.bf16.msra.mxu1 %v2931_v8  ;;  %2349 = vmatprep.mubr.msk.bf16.mxu1 %vm2785_vm0, %v2784_v1 }
 0x310   :  { %2347 = vmatprep.subr.bf16.mxu1 %v2784_v1 }
 0x313   :  { %2348 = vmatpush3.bf16.msra.mxu1 %v2938_v9 }
 0x314   :  { %2361 = vmatprep.subr.bf16.mxu1 %v2784_v1 }
 0x3e1   :  { %v573_v39 = vpop.f32.mrb[0].mxu1 }
 0x3e2   :  { %v2514_v40 = vadd.f32 %v2955_v12, %v573_v39  ;;  %v2335_v41 = vpop.f32.mrb[1].mxu1 }
 0x3e3   :  { %v576_v42 = vpop.f32.mrb[2].mxu1 }
 0x3e4   :  { %2614 = vtanh.f32 %v2514_v40  ;;  %v2336_v43 = vpop.f32.mrb[3].mxu1  ;;  %v2138_v45 = vmul.f32 -1.442695, %v2514_v40 }
 0x3e6   :  { %2616 = vpow2.f32 %v2138_v45 }
 0x3ee   :  { %v2615_v44 = vpop.eup %2614 }
 0x3ef   :  { %589 = vrot.lane.b32.xlu1 %v2615_v44, %s2786_s4 }
 0x3f0   :  { %v2617_v46 = vpop.eup %2616 }
 0x3f1   :  { %v583_v47 = vadd.f32 1.0, %v2617_v46 }
 0x3f3   :  { %2618 = vrcp.f32 %v583_v47 }
 0x3fd   :  { %v2619_v48 = vpop.eup %2618 }
 0x3fe   :  { %v587_v51 = vmul.f32 %v2619_v48, %v525_v29 }
 0x461   :  { %v590_v49 = vpop.permute.xlu1 %589 }
 0x462   :  { %v592_v50 = vmul.f32 %v2619_v48, %v590_v49 }
 0x464   :  { %594 = vrot.lane.b32.xlu0 %v592_v50, %s2787_s16 }
 0x4d6   :  { %v595_v52 = vpop.permute.xlu0 %594 }
 0x4d7   :  { %v597_v53 = vadd.f32 %v595_v52, %v587_v51 }
 0x4d9   :  { %2620 = vtanh.f32 %v597_v53 }
 0x4e3   :  { %v2621_v54 = vpop.eup %2620 }
 0x4e4   :  { %600 = vrot.lane.b32.xlu1 %v2621_v54, %s2786_s4 }
 0x556   :  { %v601_v55 = vpop.permute.xlu1 %600 }
 0x557   :  { %v603_v56 = vmul.f32 %v2619_v48, %v601_v55 }
 0x559   :  { %v604_v57 = vpack.c.bf16 %v603_v56, %v603_v56 }
 0x55b   :  { %606 = vrot.lane.b32.xlu0 %v604_v57, %s2787_s16 }
 0x5cd   :  { %v3015_v58 = vpop.permute.xlu0 %606 }
 0x5ce   :  { %2342 = vmatmul.mubr.msk.bf16.vlgmr.msra.gmra.mrb[4].mxu0 %vm459_vm3, %v3015_v58 }
 0x5cf   :  { %2354 = vmatpush3.bf16.msra.mxu0 %v2931_v8  ;;  %2357 = vmatprep.mubr.msk.bf16.mxu0 %vm2785_vm0, %v2784_v1 }
 0x5d0   :  { %2355 = vmatprep.subr.bf16.mxu0 %v2784_v1 }
 0x5d3   :  { %2356 = vmatpush3.bf16.msra.mxu0 %v2938_v9 }
 0x5d4   :  { %2369 = vmatprep.subr.bf16.mxu0 %v2784_v1 }
 0x6a1   :  { %v645_v59 = vpop.f32.mrb[4].mxu0 }
 0x6a2   :  { %v2515_v60 = vadd.f32 %v2955_v12, %v645_v59  ;;  %v2343_v61 = vpop.f32.mrb[5].mxu0 }
 0x6a3   :  { %v648_v62 = vpop.f32.mrb[6].mxu0 }
 0x6a4   :  { %2622 = vtanh.f32 %v2515_v60  ;;  %v2344_v63 = vpop.f32.mrb[7].mxu0  ;;  %v2140_v2 = vmul.f32 -1.442695, %v2515_v60 }
 0x6a6   :  { %2624 = vpow2.f32 %v2140_v2 }
 0x6ae   :  { %v2623_v0 = vpop.eup %2622 }
 0x6af   :  { %661 = vrot.lane.b32.xlu1 %v2623_v0, %s2786_s4 }
 0x6b0   :  { %v2625_v3 = vpop.eup %2624 }
 0x6b1   :  { %v655_v4 = vadd.f32 1.0, %v2625_v3 }
 0x6b3   :  { %2626 = vrcp.f32 %v655_v4 }
 0x6bd   :  { %v2627_v5 = vpop.eup %2626 }
 0x6be   :  { %v659_v10 = vmul.f32 %v2627_v5, %v597_v53 }
 0x721   :  { %v662_v6 = vpop.permute.xlu1 %661 }
 0x722   :  { %v664_v7 = vmul.f32 %v2627_v5, %v662_v6 }
 0x724   :  { %666 = vrot.lane.b32.xlu0 %v664_v7, %s2787_s16 }
 0x796   :  { %v667_v11 = vpop.permute.xlu0 %666 }
 0x797   :  { %v669_v13 = vadd.f32 %v667_v11, %v659_v10 }
 0x799   :  { %2628 = vtanh.f32 %v669_v13 }
 0x7a3   :  { %v2629_v14 = vpop.eup %2628 }
 0x7a4   :  { %672 = vrot.lane.b32.xlu1 %v2629_v14, %s2786_s4 }
 0x816   :  { %v673_v15 = vpop.permute.xlu1 %672 }
 0x817   :  { %v675_v16 = vmul.f32 %v2627_v5, %v673_v15 }
 0x819   :  { %v676_v17 = vpack.c.bf16 %v675_v16, %v675_v16 }
 0x81b   :  { %678 = vrot.lane.b32.xlu0 %v676_v17, %s2787_s16 }
 0x88d   :  { %v3030_v18 = vpop.permute.xlu0 %678 }
 0x88e   :  { %2350 = vmatmul.mubr.msk.bf16.vlgmr.msra.gmra.mrb[4].mxu1 %vm459_vm3, %v3030_v18 }
 0x88f   :  { %2362 = vmatpush3.bf16.msra.mxu1 %v2931_v8  ;;  %2365 = vmatprep.mubr.msk.bf16.mxu1 %vm2785_vm0, %v2784_v1 }
 0x890   :  { %2363 = vmatprep.subr.bf16.mxu1 %v2784_v1 }
 0x893   :  { %2364 = vmatpush3.bf16.msra.mxu1 %v2938_v9 }
 0x894   :  { %2377 = vmatprep.subr.bf16.mxu1 %v2784_v1 }
 0x961   :  { %v717_v19 = vpop.f32.mrb[4].mxu1 }
 0x962   :  { %v2516_v20 = vadd.f32 %v2955_v12, %v717_v19  ;;  %v2351_v21 = vpop.f32.mrb[5].mxu1  ;;  %v3075_v19 = vld [vmem:[%s3355_s6] sm:$0xff]  }
 0x963   :  { %v720_v22 = vpop.f32.mrb[6].mxu1  ;;  %v3085_v21 = vld [vmem:[%s3355_s6 + $0x8] sm:$0xff]  }
 0x964   :  { %2630 = vtanh.f32 %v2516_v20  ;;  %v2352_v23 = vpop.f32.mrb[7].mxu1  ;;  %v2142_v25 = vmul.f32 -1.442695, %v2516_v20 }
 0x966   :  { %2632 = vpow2.f32 %v2142_v25 }
 0x96e   :  { %v2631_v24 = vpop.eup %2630 }
 0x96f   :  { %733 = vrot.lane.b32.xlu1 %v2631_v24, %s2786_s4 }
 0x970   :  { %v2633_v26 = vpop.eup %2632 }
 0x971   :  { %v727_v27 = vadd.f32 1.0, %v2633_v26 }
 0x973   :  { %2634 = vrcp.f32 %v727_v27 }
 0x97d   :  { %v2635_v28 = vpop.eup %2634 }
 0x97e   :  { %v731_v31 = vmul.f32 %v2635_v28, %v669_v13 }
 0x9e1   :  { %v734_v29 = vpop.permute.xlu1 %733 }
 0x9e2   :  { %v736_v30 = vmul.f32 %v2635_v28, %v734_v29 }
 0x9e4   :  { %738 = vrot.lane.b32.xlu0 %v736_v30, %s2787_s16 }
 0xa56   :  { %v739_v32 = vpop.permute.xlu0 %738 }
 0xa57   :  { %v741_v33 = vadd.f32 %v739_v32, %v731_v31 }
 0xa59   :  { %2636 = vtanh.f32 %v741_v33 }
 0xa63   :  { %v2637_v34 = vpop.eup %2636 }
 0xa64   :  { %744 = vrot.lane.b32.xlu1 %v2637_v34, %s2786_s4 }
 0xad6   :  { %v745_v35 = vpop.permute.xlu1 %744 }
 0xad7   :  { %v747_v36 = vmul.f32 %v2635_v28, %v745_v35 }
 0xad9   :  { %v748_v37 = vpack.c.bf16 %v747_v36, %v747_v36 }
 0xadb   :  { %750 = vrot.lane.b32.xlu0 %v748_v37, %s2787_s16 }
 0xb4d   :  { %v3045_v39 = vpop.permute.xlu0 %750 }
 0xb4e   :  { %2358 = vmatmul.mubr.msk.bf16.vlgmr.msra.gmra.mrb[8].mxu0 %vm459_vm3, %v3045_v39 }
 0xb4f   :  { %2370 = vmatpush3.bf16.msra.mxu0 %v2931_v8  ;;  %2373 = vmatprep.mubr.msk.bf16.mxu0 %vm2785_vm0, %v2784_v1 }
 0xb50   :  { %2371 = vmatprep.subr.bf16.mxu0 %v2784_v1 }
 0xb53   :  { %2372 = vmatpush3.bf16.msra.mxu0 %v2938_v9 }
 0xb54   :  { %2385 = vmatprep.subr.bf16.mxu0 %v2784_v1 }
 0xc21   :  { %v789_v40 = vpop.f32.mrb[8].mxu0 }
 0xc22   :  { %v2517_v41 = vadd.f32 %v2955_v12, %v789_v40  ;;  %v2359_v42 = vpop.f32.mrb[9].mxu0 }
 0xc23   :  { %v792_v43 = vpop.f32.mrb[10].mxu0 }
 0xc24   :  { %2638 = vtanh.f32 %v2517_v41  ;;  %v2360_v44 = vpop.f32.mrb[11].mxu0  ;;  %v2144_v46 = vmul.f32 -1.442695, %v2517_v41  ;;  %v3126_v41 = vld [vmem:[%s3356_s7] sm:$0xff]   ;;  %v3135_v43 = vld [vmem:[%s3356_s7 + $0x8] sm:$0xff]  }
 0xc25   :  { %v2162_v44 = vld [vmem:[%s3350_s1 + $0x2] sm:$0x3] }
 0xc26   :  { %2640 = vpow2.f32 %v2144_v46 }
 0xc2e   :  { %v2639_v45 = vpop.eup %2638 }
 0xc2f   :  { %805 = vrot.lane.b32.xlu1 %v2639_v45, %s2786_s4  ;;  %v1405_v45 = vpack.c.bf16 %v2162_v44, %v2162_v44 }
 0xc30   :  { %v2641_v47 = vpop.eup %2640 }
 0xc31   :  { %v799_v48 = vadd.f32 1.0, %v2641_v47 }
 0xc33   :  { %2642 = vrcp.f32 %v799_v48 }
 0xc3d   :  { %v2643_v49 = vpop.eup %2642 }
 0xc3e   :  { %v803_v52 = vmul.f32 %v2643_v49, %v741_v33 }
 0xca1   :  { %v806_v50 = vpop.permute.xlu1 %805 }
 0xca2   :  { %v808_v51 = vmul.f32 %v2643_v49, %v806_v50 }
 0xca4   :  { %810 = vrot.lane.b32.xlu0 %v808_v51, %s2787_s16 }
 0xd16   :  { %v811_v53 = vpop.permute.xlu0 %810 }
 0xd17   :  { %v813_v54 = vadd.f32 %v811_v53, %v803_v52 }
 0xd19   :  { %2644 = vtanh.f32 %v813_v54 }
 0xd23   :  { %v2645_v55 = vpop.eup %2644 }
 0xd24   :  { %816 = vrot.lane.b32.xlu1 %v2645_v55, %s2786_s4 }
 0xd96   :  { %v817_v56 = vpop.permute.xlu1 %816 }
 0xd97   :  { %v819_v57 = vmul.f32 %v2643_v49, %v817_v56  ;;  %v3185_v49 = vld [vmem:[%s3357_s8] ss:$0 sm:$0xff]  ;;  %v2163_v56 = vld [vmem:[%s3351_s2 + $0x2] sm:$0x3]  ;;  %s2788_s2 = smov 96  }
 0xd99   :  { %v820_v59 = vpack.c.bf16 %v819_v57, %v819_v57 }
 0xd9b   :  { %822 = vrot.lane.b32.xlu0 %v820_v59, %s2787_s16 }
 0xe0d   :  { %v823_v60 = vpop.permute.xlu0 %822 }
 0xe0e   :  { %2366 = vmatmul.mubr.msk.bf16.vlgmr.msra.gmra.mrb[8].mxu1 %vm459_vm3, %v823_v60 }
 0xe0f   :  { %2378 = vmatpush3.bf16.msra.mxu1 %v2931_v8  ;;  %2381 = vmatprep.mubr.msk.bf16.mxu1 %vm2785_vm0, %v2784_v1 }
 0xe10   :  { %2379 = vmatprep.subr.bf16.mxu1 %v2784_v1 }
 0xe13   :  { %2380 = vmatpush3.bf16.msra.mxu1 %v2938_v9 }
 0xe14   :  { %2393 = vmatprep.subr.bf16.mxu1 %v2784_v1 }
 0xee1   :  { %v861_v61 = vpop.f32.mrb[8].mxu1 }
 0xee2   :  { %v2518_v62 = vadd.f32 %v2955_v12, %v861_v61  ;;  %v2367_v63 = vpop.f32.mrb[9].mxu1 }
 0xee3   :  { %v864_v0 = vpop.f32.mrb[10].mxu1 }
 0xee4   :  { %2646 = vtanh.f32 %v2518_v62  ;;  %v2368_v2 = vpop.f32.mrb[11].mxu1  ;;  %v2146_v8 = vmul.f32 -1.442695, %v2518_v62 }
 0xee6   :  { %2648 = vpow2.f32 %v2146_v8 }
 0xeee   :  { %v2647_v3 = vpop.eup %2646 }
 0xeef   :  { %877 = vrot.lane.b32.xlu1 %v2647_v3, %s2786_s4 }
 0xef0   :  { %v2649_v4 = vpop.eup %2648 }
 0xef1   :  { %v871_v5 = vadd.f32 1.0, %v2649_v4 }
 0xef3   :  { %2650 = vrcp.f32 %v871_v5 }
 0xefd   :  { %v2651_v6 = vpop.eup %2650 }
 0xefe   :  { %v875_v10 = vmul.f32 %v2651_v6, %v813_v54 }
 0xf61   :  { %v878_v7 = vpop.permute.xlu1 %877 }
 0xf62   :  { %v880_v9 = vmul.f32 %v2651_v6, %v878_v7 }
 0xf64   :  { %882 = vrot.lane.b32.xlu0 %v880_v9, %s2787_s16 }
 0xfd6   :  { %v883_v11 = vpop.permute.xlu0 %882 }
 0xfd7   :  { %v885_v13 = vadd.f32 %v883_v11, %v875_v10 }
 0xfd9   :  { %2652 = vtanh.f32 %v885_v13 }
 0xfe3   :  { %v2653_v14 = vpop.eup %2652 }
 0xfe4   :  { %888 = vrot.lane.b32.xlu1 %v2653_v14, %s2786_s4 }
0x1056   :  { %v889_v15 = vpop.permute.xlu1 %888 }
0x1057   :  { %v891_v16 = vmul.f32 %v2651_v6, %v889_v15 }
0x1059   :  { %v892_v17 = vpack.c.bf16 %v891_v16, %v891_v16 }
0x105b   :  { %894 = vrot.lane.b32.xlu0 %v892_v17, %s2787_s16 }
0x10cd   :  { %v3077_v20 = vpop.permute.xlu0 %894 }
0x10ce   :  { %2374 = vmatmul.mubr.msk.bf16.vlgmr.msra.gmra.mrb[12].mxu0 %vm459_vm3, %v3077_v20 }
0x10cf   :  { %2386 = vmatpush3.bf16.msra.mxu0 %v3075_v19  ;;  %2389 = vmatprep.mubr.msk.bf16.mxu0 %vm2785_vm0, %v2784_v1 }
0x10d0   :  { %2387 = vmatprep.subr.bf16.mxu0 %v2784_v1 }
0x10d3   :  { %2388 = vmatpush3.bf16.msra.mxu0 %v3085_v21 }
0x10d4   :  { %2401 = vmatprep.subr.bf16.mxu0 %v2784_v1 }
0x10d6   :  { %2390 = vmatmul.mubr.msk.bf16.vlgmr.msra.gmra.mrb[16].mxu0 %vm459_vm3, %v3000_v38 }
0x10d7   :  { %2402 = vmatpush3.bf16.msra.mxu0 %v3075_v19  ;;  %2405 = vmatprep.mubr.msk.bf16.mxu0 %vm2785_vm0, %v2784_v1 }
0x10d8   :  { %2403 = vmatprep.subr.bf16.mxu0 %v2784_v1 }
0x10db   :  { %2404 = vmatpush3.bf16.msra.mxu0 %v3085_v21 }
0x10dc   :  { %2417 = vmatprep.subr.bf16.mxu0 %v2784_v1 }
0x10de   :  { %2406 = vmatmul.mubr.msk.bf16.vlgmr.msra.gmra.mrb[20].mxu0 %vm459_vm3, %v3030_v18 }
0x10df   :  { %2418 = vmatpush3.bf16.msra.mxu0 %v3075_v19  ;;  %2421 = vmatprep.mubr.msk.bf16.mxu0 %vm2785_vm0, %v2784_v1 }
0x10e0   :  { %2419 = vmatprep.subr.bf16.mxu0 %v2784_v1 }
0x10e3   :  { %2420 = vmatpush3.bf16.msra.mxu0 %v3085_v21 }
0x10e4   :  { %2433 = vmatprep.subr.bf16.mxu0 %v2784_v1 }
0x10e6   :  { %2422 = vmatmul.mubr.msk.bf16.vlgmr.msra.gmra.mrb[24].mxu0 %vm459_vm3, %v823_v60 }
0x10e7   :  { %2434 = vmatpush3.bf16.msra.mxu0 %v3075_v19  ;;  %2437 = vmatprep.mubr.msk.bf16.mxu0 %vm2785_vm0, %v2784_v1 }
0x10e8   :  { %2435 = vmatprep.subr.bf16.mxu0 %v2784_v1 }
0x10eb   :  { %2436 = vmatpush3.bf16.msra.mxu0 %v3085_v21 }
0x10ec   :  { %2449 = vmatprep.subr.bf16.mxu0 %v2784_v1 }
0x11a1   :  { %v933_v38 = vpop.f32.mrb[12].mxu0 }
0x11a2   :  { %v2519_v18 = vadd.f32 %v2955_v12, %v933_v38  ;;  %v2375_v22 = vpop.f32.mrb[13].mxu0 }
0x11a3   :  { %v936_v23 = vpop.f32.mrb[14].mxu0 }
0x11a4   :  { %2654 = vtanh.f32 %v2519_v18  ;;  %v2376_v24 = vpop.f32.mrb[15].mxu0  ;;  %v2148_v26 = vmul.f32 -1.442695, %v2519_v18 }
0x11a6   :  { %2656 = vpow2.f32 %v2148_v26 }
0x11ae   :  { %v2655_v25 = vpop.eup %2654 }
0x11af   :  { %949 = vrot.lane.b32.xlu1 %v2655_v25, %s2786_s4 }
0x11b0   :  { %v2657_v27 = vpop.eup %2656 }
0x11b1   :  { %v943_v28 = vadd.f32 1.0, %v2657_v27 }
0x11b3   :  { %2658 = vrcp.f32 %v943_v28 }
0x11bd   :  { %v2659_v29 = vpop.eup %2658 }
0x11be   :  { %v947_v32 = vmul.f32 %v2659_v29, %v885_v13 }
0x1221   :  { %v950_v30 = vpop.permute.xlu1 %949 }
0x1222   :  { %v952_v31 = vmul.f32 %v2659_v29, %v950_v30 }
0x1224   :  { %954 = vrot.lane.b32.xlu0 %v952_v31, %s2787_s16 }
0x1296   :  { %v955_v33 = vpop.permute.xlu0 %954 }
0x1297   :  { %v3118_v34 = vadd.f32 %v955_v33, %v947_v32 }
0x1299   :  { %2660 = vtanh.f32 %v3118_v34 }
0x12a3   :  { %v2661_v35 = vpop.eup %2660 }
0x12a4   :  { %960 = vrot.lane.b32.xlu1 %v2661_v35, %s2786_s4 }
0x1316   :  { %v961_v36 = vpop.permute.xlu1 %960 }
0x1317   :  { %v963_v37 = vmul.f32 %v2659_v29, %v961_v36 }
0x1319   :  { %v964_v40 = vpack.c.bf16 %v963_v37, %v963_v37 }
0x131b   :  { %966 = vrot.lane.b32.xlu0 %v964_v40, %s2787_s16 }
0x138d   :  { %v967_v42 = vpop.permute.xlu0 %966 }
0x138e   :  { %2382 = vmatmul.mubr.msk.bf16.vlgmr.msra.gmra.mrb[12].mxu1 %vm459_vm3, %v967_v42  ;;  %2438 = vmatmul.mubr.msk.bf16.vlgmr.msra.gmra.mrb[28].mxu0 %vm459_vm3, %v967_v42 }
0x138f   :  { %2394 = vmatpush3.bf16.msra.mxu1 %v3075_v19  ;;  %2450 = vmatpush3.bf16.msra.mxu0 %v3126_v41 }
0x1390   :  { %2395 = vmatprep.subr.bf16.mxu1 %v2784_v1  ;;  %2451 = vmatprep.subr.bf16.mxu0 %v2784_v1 }
0x1391   :  { %2397 = vmatprep.mubr.msk.bf16.mxu1 %vm2785_vm0, %v2784_v1  ;;  %2453 = vmatprep.mubr.msk.bf16.mxu0 %vm2785_vm0, %v2784_v1 }
0x1393   :  { %2396 = vmatpush3.bf16.msra.mxu1 %v3085_v21  ;;  %2452 = vmatpush3.bf16.msra.mxu0 %v3135_v43 }
0x1394   :  { %2409 = vmatprep.subr.bf16.mxu1 %v2784_v1  ;;  %2465 = vmatprep.subr.bf16.mxu0 %v2784_v1 }
0x1396   :  { %2398 = vmatmul.mubr.msk.bf16.vlgmr.msra.gmra.mrb[16].mxu1 %vm459_vm3, %v3015_v58  ;;  %2454 = vmatmul.mubr.msk.bf16.vlgmr.msra.gmra.mrb[16].mxu0 %vm459_vm3, %v1405_v45 }
0x1397   :  { %2410 = vmatpush3.bf16.msra.mxu1 %v3075_v19  ;;  %2413 = vmatprep.mubr.msk.bf16.mxu1 %vm2785_vm0, %v2784_v1 }
0x1398   :  { %2411 = vmatprep.subr.bf16.mxu1 %v2784_v1  ;;  %2466 = vmatpush3.bf16.msra.mxu0 %v3126_v41 }
0x1399   :  { %2467 = vmatprep.subr.bf16.mxu0 %v2784_v1  ;;  %2469 = vmatprep.mubr.msk.bf16.mxu0 %vm2785_vm0, %v2784_v1 }
0x139b   :  { %2412 = vmatpush3.bf16.msra.mxu1 %v3085_v21 }
0x139c   :  { %2425 = vmatprep.subr.bf16.mxu1 %v2784_v1  ;;  %2468 = vmatpush3.bf16.msra.mxu0 %v3135_v43 }
0x139d   :  { %2481 = vmatprep.subr.bf16.mxu0 %v2784_v1 }
0x139e   :  { %2414 = vmatmul.mubr.msk.bf16.vlgmr.msra.gmra.mrb[20].mxu1 %vm459_vm3, %v3045_v39 }
0x139f   :  { %2426 = vmatpush3.bf16.msra.mxu1 %v3075_v19  ;;  %2429 = vmatprep.mubr.msk.bf16.mxu1 %vm2785_vm0, %v2784_v1 }
0x13a0   :  { %2427 = vmatprep.subr.bf16.mxu1 %v2784_v1 }
0x13a3   :  { %2428 = vmatpush3.bf16.msra.mxu1 %v3085_v21 }
0x13a4   :  { %2441 = vmatprep.subr.bf16.mxu1 %v2784_v1 }
0x13a6   :  { %2430 = vmatmul.mubr.msk.bf16.vlgmr.msra.gmra.mrb[24].mxu1 %vm459_vm3, %v3077_v20 }
0x13a7   :  { %2442 = vmatpush3.bf16.msra.mxu1 %v3075_v19  ;;  %2445 = vmatprep.mubr.msk.bf16.mxu1 %vm2785_vm0, %v2784_v1 }
0x13a8   :  { %2443 = vmatprep.subr.bf16.mxu1 %v2784_v1 }
0x13ab   :  { %2444 = vmatpush3.bf16.msra.mxu1 %v3085_v21 }
0x13ac   :  { %2457 = vmatprep.subr.bf16.mxu1 %v2784_v1 }
0x1461   :  { %v1005_v58 = vpop.f32.mrb[12].mxu1 }
0x1462   :  { %v2520_v39 = vadd.f32 %v2955_v12, %v1005_v58  ;;  %v2383_v46 = vpop.f32.mrb[13].mxu1 }
0x1463   :  { %v1008_v47 = vpop.f32.mrb[14].mxu1 }
0x1464   :  { %2662 = vtanh.f32 %v2520_v39  ;;  %v2384_v48 = vpop.f32.mrb[15].mxu1  ;;  %v2150_v57 = vmul.f32 -1.442695, %v2520_v39 }
0x1469   :  { %v1455_v50 = vpop.f32.mrb[16].mxu0 }
0x146a   :  { %v2521_v51 = vadd.f32 %v3185_v49, %v1455_v50  ;;  %v2455_v52 = vpop.f32.mrb[17].mxu0 }
0x146b   :  { %v1458_v53 = vpop.f32.mrb[18].mxu0 }
0x146c   :  { %2664 = vtanh.f32 %v2521_v51  ;;  %v2456_v54 = vpop.f32.mrb[19].mxu0  ;;  %v2167_v59 = vmul.f32 -1.442695, %v2521_v51 }
0x146d   :  { %2666 = vpow2.f32 %v2150_v57 }
0x146e   :  { %v2663_v55 = vpop.eup %2662  ;;  %2668 = vpow2.f32 %v2167_v59 }
0x146f   :  { %1021 = vrot.lane.b32.xlu1 %v2663_v55, %s2786_s4 }
0x1476   :  { %v2665_v12 = vpop.eup %2664 }
0x1477   :  { %1475 = vrot.lane.b32.xlu0 %v2665_v12, %s2786_s4  ;;  %v2667_v60 = vpop.eup %2666 }
0x1478   :  { %v1015_v61 = vadd.f32 1.0, %v2667_v60  ;;  %v2669_v62 = vpop.eup %2668 }
0x1479   :  { %v1465_v63 = vadd.f32 1.0, %v2669_v62 }
0x147a   :  { %2670 = vrcp.f32 %v1015_v61 }
0x147b   :  { %1470 = vrot.lane.b32.xlu0 %v2163_v56, %s2787_s16  ;;  %2672 = vrcp.f32 %v1465_v63 }
0x1484   :  { %v2671_v0 = vpop.eup %2670 }
0x1485   :  { %v2673_v8 = vpop.eup %2672  ;;  %v1019_v6 = vmul.f32 %v2671_v0, %v3118_v34 }
0x14e1   :  { %v1022_v2 = vpop.permute.xlu1 %1021 }
0x14e2   :  { %v1024_v3 = vmul.f32 %v2671_v0, %v1022_v2 }
0x14e4   :  { %1026 = vrot.lane.b32.xlu1 %v1024_v3, %s2787_s16 }
0x14e9   :  { %v1476_v4 = vpop.permute.xlu0 %1475 }
0x14ea   :  { %v1478_v5 = vmul.f32 %v2673_v8, %v1476_v4 }
0x14ec   :  { %1480 = vrot.lane.b32.xlu1 %v1478_v5, %s2787_s16 }
0x14ed   :  { %v1471_v10 = vpop.permute.xlu0 %1470 }
0x14ee   :  { %v1473_v11 = vmul.f32 %v2673_v8, %v1471_v10 }
0x1556   :  { %v1027_v7 = vpop.permute.xlu1 %1026 }
0x1557   :  { %v3197_v9 = vadd.f32 %v1027_v7, %v1019_v6 }
0x1559   :  { %2674 = vtanh.f32 %v3197_v9 }
0x155e   :  { %v1481_v13 = vpop.permute.xlu1 %1480 }
0x155f   :  { %v1483_v14 = vadd.f32 %v1481_v13, %v1473_v11 }
0x1561   :  { %2676 = vtanh.f32 %v1483_v14 }
0x1563   :  { %v2675_v15 = vpop.eup %2674 }
0x1564   :  { %1032 = vrot.lane.b32.xlu0 %v2675_v15, %s2786_s4 }
0x156b   :  { %v2677_v16 = vpop.eup %2676 }
0x156c   :  { %1486 = vrot.lane.b32.xlu1 %v2677_v16, %s2786_s4 }
0x15d6   :  { %v1033_v17 = vpop.permute.xlu0 %1032 }
0x15d7   :  { %v3202_v19 = vmul.f32 %v2671_v0, %v1033_v17 }
0x15d9   :  { %v1047_v20 = vpack.c.bf16 %v3202_v19, %v3202_v19 }
0x15db   :  { %1356 = vrot.lane.b32.xlu0 %v1047_v20, %s2787_s16 }
0x15de   :  { %v1487_v21 = vpop.permute.xlu1 %1486 }
0x15df   :  { %v3207_v38 = vmul.f32 %v2673_v8, %v1487_v21 }
0x15e1   :  { %v1490_v18 = vpack.c.bf16 %v3207_v38, %v3207_v38 }
0x15e3   :  { %1492 = vrot.lane.b32.xlu1 %v1490_v18, %s2787_s16 }
0x164d   :  { %v1357_v22 = vpop.permute.xlu0 %1356 }
0x164e   :  { %2446 = vmatmul.mubr.msk.bf16.vlgmr.msra.gmra.mrb[28].mxu1 %vm459_vm3, %v1357_v22 }
0x164f   :  { %2458 = vmatpush3.bf16.msra.mxu1 %v3126_v41  ;;  %2461 = vmatprep.mubr.msk.bf16.mxu1 %vm2785_vm0, %v2784_v1 }
0x1650   :  { %2459 = vmatprep.subr.bf16.mxu1 %v2784_v1 }
0x1653   :  { %2460 = vmatpush3.bf16.msra.mxu1 %v3135_v43 }
0x1654   :  { %2473 = vmatprep.subr.bf16.mxu1 %v2784_v1 }
0x1655   :  { %v1493_v23 = vpop.permute.xlu1 %1492 }
0x1656   :  { %2462 = vmatmul.mubr.msk.bf16.vlgmr.msra.gmra.mrb[16].mxu1 %vm459_vm3, %v1493_v23 }
0x1657   :  { %2474 = vmatpush3.bf16.msra.mxu1 %v3126_v41  ;;  %2477 = vmatprep.mubr.msk.bf16.mxu1 %vm2785_vm0, %v2784_v1 }
0x1658   :  { %2475 = vmatprep.subr.bf16.mxu1 %v2784_v1 }
0x165b   :  { %2476 = vmatpush3.bf16.msra.mxu1 %v3135_v43 }
0x165c   :  { %2489 = vmatprep.subr.bf16.mxu1 %v2784_v1 }
0x1729   :  { %v1531_v24 = vpop.f32.mrb[16].mxu1 }
0x172a   :  { %v2522_v25 = vadd.f32 %v3185_v49, %v1531_v24  ;;  %v2463_v26 = vpop.f32.mrb[17].mxu1 }
0x172b   :  { %v1534_v27 = vpop.f32.mrb[18].mxu1 }
0x172c   :  { %2678 = vtanh.f32 %v2522_v25  ;;  %v2464_v28 = vpop.f32.mrb[19].mxu1  ;;  %v2169_v30 = vmul.f32 -1.442695, %v2522_v25 }
0x172e   :  { %2680 = vpow2.f32 %v2169_v30 }
0x1736   :  { %v2679_v29 = vpop.eup %2678 }
0x1737   :  { %1547 = vrot.lane.b32.xlu0 %v2679_v29, %s2786_s4 }
0x1738   :  { %v2681_v31 = vpop.eup %2680 }
0x1739   :  { %v1541_v32 = vadd.f32 1.0, %v2681_v31 }
0x173b   :  { %2682 = vrcp.f32 %v1541_v32 }
0x1745   :  { %v2683_v33 = vpop.eup %2682 }
0x1746   :  { %v1545_v36 = vmul.f32 %v2683_v33, %v1483_v14 }
0x17a9   :  { %v1548_v34 = vpop.permute.xlu0 %1547 }
0x17aa   :  { %v1550_v35 = vmul.f32 %v2683_v33, %v1548_v34 }
0x17ac   :  { %1552 = vrot.lane.b32.xlu1 %v1550_v35, %s2787_s16 }
0x181e   :  { %v1553_v37 = vpop.permute.xlu1 %1552 }
0x181f   :  { %v1555_v40 = vadd.f32 %v1553_v37, %v1545_v36 }
0x1821   :  { %2684 = vtanh.f32 %v1555_v40 }
0x182b   :  { %v2685_v42 = vpop.eup %2684 }
0x182c   :  { %1558 = vrot.lane.b32.xlu0 %v2685_v42, %s2786_s4 }
0x189e   :  { %v1559_v44 = vpop.permute.xlu0 %1558 }
0x189f   :  { %v3230_v45 = vmul.f32 %v2683_v33, %v1559_v44 }
0x18a1   :  { %v1562_v58 = vpack.c.bf16 %v3230_v45, %v3230_v45 }
0x18a3   :  { %1564 = vrot.lane.b32.xlu1 %v1562_v58, %s2787_s16 }
0x1915   :  { %v1565_v39 = vpop.permute.xlu1 %1564 }
0x1916   :  { %2470 = vmatmul.mubr.msk.bf16.vlgmr.msra.gmra.mrb[20].mxu0 %vm459_vm3, %v1565_v39 }
0x1917   :  { %2482 = vmatpush3.bf16.msra.mxu0 %v3126_v41  ;;  %2485 = vmatprep.mubr.msk.bf16.mxu0 %vm2785_vm0, %v2784_v1 }
0x1918   :  { %2483 = vmatprep.subr.bf16.mxu0 %v2784_v1 }
0x191b   :  { %2484 = vmatpush3.bf16.msra.mxu0 %v3135_v43 }
0x191c   :  { %2497 = vmatprep.subr.bf16.mxu0 %v2784_v1 }
0x19e9   :  { %v1603_v46 = vpop.f32.mrb[20].mxu0 }
0x19ea   :  { %v2523_v47 = vadd.f32 %v3185_v49, %v1603_v46  ;;  %v2471_v48 = vpop.f32.mrb[21].mxu0 }
0x19eb   :  { %v1606_v50 = vpop.f32.mrb[22].mxu0 }
0x19ec   :  { %2686 = vtanh.f32 %v2523_v47  ;;  %v2472_v51 = vpop.f32.mrb[23].mxu0  ;;  %v2171_v53 = vmul.f32 -1.442695, %v2523_v47 }
0x19ee   :  { %2688 = vpow2.f32 %v2171_v53 }
0x19f6   :  { %v2687_v52 = vpop.eup %2686 }
0x19f7   :  { %1619 = vrot.lane.b32.xlu0 %v2687_v52, %s2786_s4 }
0x19f8   :  { %v2689_v54 = vpop.eup %2688 }
0x19f9   :  { %v1613_v55 = vadd.f32 1.0, %v2689_v54 }
0x19fb   :  { %2690 = vrcp.f32 %v1613_v55 }
0x1a05   :  { %v2691_v12 = vpop.eup %2690 }
0x1a06   :  { %v1617_v59 = vmul.f32 %v2691_v12, %v1555_v40 }
0x1a69   :  { %v1620_v56 = vpop.permute.xlu0 %1619 }
0x1a6a   :  { %v1622_v57 = vmul.f32 %v2691_v12, %v1620_v56 }
0x1a6c   :  { %1624 = vrot.lane.b32.xlu1 %v1622_v57, %s2787_s16 }
0x1ade   :  { %v1625_v60 = vpop.permute.xlu1 %1624 }
0x1adf   :  { %v1627_v61 = vadd.f32 %v1625_v60, %v1617_v59 }
0x1ae1   :  { %2692 = vtanh.f32 %v1627_v61 }
0x1aeb   :  { %v2693_v62 = vpop.eup %2692 }
0x1aec   :  { %1630 = vrot.lane.b32.xlu0 %v2693_v62, %s2786_s4 }
0x1b5e   :  { %v1631_v63 = vpop.permute.xlu0 %1630 }
0x1b5f   :  { %v3246_v0 = vmul.f32 %v2691_v12, %v1631_v63 }
0x1b61   :  { %v1634_v2 = vpack.c.bf16 %v3246_v0, %v3246_v0 }
0x1b63   :  { %1636 = vrot.lane.b32.xlu1 %v1634_v2, %s2787_s16 }
0x1bd5   :  { %v1637_v3 = vpop.permute.xlu1 %1636 }
0x1bd6   :  { %2478 = vmatmul.mubr.msk.bf16.vlgmr.msra.gmra.mrb[20].mxu1 %vm459_vm3, %v1637_v3 }
0x1bd7   :  { %2490 = vmatpush3.bf16.msra.mxu1 %v3126_v41  ;;  %2493 = vmatprep.mubr.msk.bf16.mxu1 %vm2785_vm0, %v2784_v1 }
0x1bd8   :  { %2491 = vmatprep.subr.bf16.mxu1 %v2784_v1 }
0x1bdb   :  { %2492 = vmatpush3.bf16.msra.mxu1 %v3135_v43 }
0x1bdc   :  { %2505 = vmatprep.subr.bf16.mxu1 %v2784_v1 }
0x1ca9   :  { %v1675_v8 = vpop.f32.mrb[20].mxu1 }
0x1caa   :  { %v2524_v4 = vadd.f32 %v3185_v49, %v1675_v8  ;;  %v2479_v5 = vpop.f32.mrb[21].mxu1 }
0x1cab   :  { %v1678_v6 = vpop.f32.mrb[22].mxu1 }
0x1cac   :  { %2694 = vtanh.f32 %v2524_v4  ;;  %v2480_v7 = vpop.f32.mrb[23].mxu1  ;;  %v2173_v11 = vmul.f32 -1.442695, %v2524_v4 }
0x1cae   :  { %2696 = vpow2.f32 %v2173_v11 }
0x1cb6   :  { %v2695_v10 = vpop.eup %2694 }
0x1cb7   :  { %1691 = vrot.lane.b32.xlu0 %v2695_v10, %s2786_s4 }
0x1cb8   :  { %v2697_v13 = vpop.eup %2696 }
0x1cb9   :  { %v1685_v14 = vadd.f32 1.0, %v2697_v13 }
0x1cbb   :  { %2698 = vrcp.f32 %v1685_v14 }
0x1cc5   :  { %v2699_v15 = vpop.eup %2698 }
0x1cc6   :  { %v1689_v20 = vmul.f32 %v2699_v15, %v1627_v61 }
0x1d29   :  { %v1692_v16 = vpop.permute.xlu0 %1691 }
0x1d2a   :  { %v1694_v17 = vmul.f32 %v2699_v15, %v1692_v16 }
0x1d2c   :  { %1696 = vrot.lane.b32.xlu1 %v1694_v17, %s2787_s16 }
0x1d9e   :  { %v1697_v21 = vpop.permute.xlu1 %1696 }
0x1d9f   :  { %v1699_v18 = vadd.f32 %v1697_v21, %v1689_v20 }
0x1da1   :  { %2700 = vtanh.f32 %v1699_v18 }
0x1dab   :  { %v2701_v22 = vpop.eup %2700 }
0x1dac   :  { %1702 = vrot.lane.b32.xlu0 %v2701_v22, %s2786_s4 }
0x1e1e   :  { %v1703_v23 = vpop.permute.xlu0 %1702 }
0x1e1f   :  { %v3262_v24 = vmul.f32 %v2699_v15, %v1703_v23 }
0x1e21   :  { %v1706_v25 = vpack.c.bf16 %v3262_v24, %v3262_v24 }
0x1e23   :  { %1708 = vrot.lane.b32.xlu1 %v1706_v25, %s2787_s16 }
0x1e95   :  { %v1709_v26 = vpop.permute.xlu1 %1708 }
0x1e96   :  { %2486 = vmatmul.mubr.msk.bf16.vlgmr.msra.gmra.mrb[24].mxu0 %vm459_vm3, %v1709_v26 }
0x1e97   :  { %2498 = vmatpush3.bf16.msra.mxu0 %v3126_v41  ;;  %2501 = vmatprep.mubr.msk.bf16.mxu0 %vm2785_vm0, %v2784_v1 }
0x1e98   :  { %2499 = vmatprep.subr.bf16.mxu0 %v2784_v1 }
0x1e9b   :  { %2500 = vmatpush3.bf16.msra.mxu0 %v3135_v43 }
0x1f69   :  { %v1747_v27 = vpop.f32.mrb[24].mxu0 }
0x1f6a   :  { %v2525_v28 = vadd.f32 %v3185_v49, %v1747_v27  ;;  %v2487_v29 = vpop.f32.mrb[25].mxu0 }
0x1f6b   :  { %v1750_v30 = vpop.f32.mrb[26].mxu0 }
0x1f6c   :  { %2702 = vtanh.f32 %v2525_v28  ;;  %v2488_v31 = vpop.f32.mrb[27].mxu0  ;;  %v2175_v33 = vmul.f32 -1.442695, %v2525_v28 }
0x1f6e   :  { %2704 = vpow2.f32 %v2175_v33 }
0x1f76   :  { %v2703_v32 = vpop.eup %2702 }
0x1f77   :  { %1763 = vrot.lane.b32.xlu0 %v2703_v32, %s2786_s4 }
0x1f78   :  { %v2705_v34 = vpop.eup %2704 }
0x1f79   :  { %v1757_v35 = vadd.f32 1.0, %v2705_v34  ;;  %v2007_v34 = vlaneseq }
0x1f7b   :  { %2706 = vrcp.f32 %v1757_v35 }
0x1f85   :  { %v2707_v36 = vpop.eup %2706 }
0x1f86   :  { %v1761_v42 = vmul.f32 %v2707_v36, %v1699_v18 }
0x1fe9   :  { %v1764_v37 = vpop.permute.xlu0 %1763 }
0x1fea   :  { %v1766_v40 = vmul.f32 %v2707_v36, %v1764_v37 }
0x1fec   :  { %1768 = vrot.lane.b32.xlu1 %v1766_v40, %s2787_s16  ;;  %v2006_v40 = vld [vmem:[#allocation5] sm:$0xff] }
0x205e   :  { %v1769_v44 = vpop.permute.xlu1 %1768 }
0x205f   :  { %v1771_v58 = vadd.f32 %v1769_v44, %v1761_v42 }
0x2061   :  { %2708 = vtanh.f32 %v1771_v58 }
0x206b   :  { %v2709_v39 = vpop.eup %2708 }
0x206c   :  { %1774 = vrot.lane.b32.xlu0 %v2709_v39, %s2786_s4 }
0x20de   :  { %v1775_v46 = vpop.permute.xlu0 %1774 }
0x20df   :  { %v3277_v47 = vmul.f32 %v2707_v36, %v1775_v46  ;;  %v2008_v36 = vshrl.u32 %v2007_v34, 7 }
0x20e1   :  { %v1778_v48 = vpack.c.bf16 %v3277_v47, %v3277_v47  ;;  %v2009_v37 = vsub.s32 0, %v2008_v36  ;;  %v2048_v46 = vsub.s32 4, %v2008_v36 }
0x20e3   :  { %1780 = vrot.lane.b32.xlu1 %v1778_v48, %s2787_s16  ;;  %v2010_v44 = vrot.slane %v2006_v40, %v2009_v37 }
0x2155   :  { %v1781_v50 = vpop.permute.xlu1 %1780 }
0x2156   :  { %2494 = vmatmul.mubr.msk.bf16.vlgmr.msra.gmra.mrb[24].mxu1 %vm459_vm3, %v1781_v50 }
0x2157   :  { %2506 = vmatpush3.bf16.msra.mxu1 %v3126_v41  ;;  %2509 = vmatprep.mubr.msk.bf16.mxu1 %vm2785_vm0, %v2784_v1 }
0x2158   :  { %2507 = vmatprep.subr.bf16.mxu1 %v2784_v1 }
0x215b   :  { %2508 = vmatpush3.bf16.msra.mxu1 %v3135_v43 }
0x2229   :  { %v1819_v51 = vpop.f32.mrb[24].mxu1 }
0x222a   :  { %v2526_v52 = vadd.f32 %v3185_v49, %v1819_v51  ;;  %v2495_v53 = vpop.f32.mrb[25].mxu1 }
0x222b   :  { %v1822_v54 = vpop.f32.mrb[26].mxu1 }
0x222c   :  { %2710 = vtanh.f32 %v2526_v52  ;;  %v2496_v55 = vpop.f32.mrb[27].mxu1  ;;  %v2177_v56 = vmul.f32 -1.442695, %v2526_v52  ;;  %v2018_v52 = vsub.s32 1, %v2008_v36 }
0x222e   :  { %2712 = vpow2.f32 %v2177_v56  ;;  %v2038_v56 = vsub.s32 3, %v2008_v36 }
0x2236   :  { %v2711_v12 = vpop.eup %2710 }
0x2237   :  { %1835 = vrot.lane.b32.xlu0 %v2711_v12, %s2786_s4  ;;  %v2019_v12 = vrot.slane %v2006_v40, %v2018_v52 }
0x2238   :  { %v2713_v41 = vpop.eup %2712 }
0x2239   :  { %v1829_v57 = vadd.f32 1.0, %v2713_v41  ;;  %v2039_v41 = vrot.slane %v2006_v40, %v2038_v56 }
0x223b   :  { %2714 = vrcp.f32 %v1829_v57  ;;  %v2058_v57 = vsub.s32 5, %v2008_v36 }
0x2245   :  { %v2715_v59 = vpop.eup %2714 }
0x2246   :  { %v1833_v43 = vmul.f32 %v2715_v59, %v1771_v58  ;;  %v2028_v58 = vsub.s32 2, %v2008_v36 }
0x2248   :  { %v2029_v39 = vrot.slane %v2006_v40, %v2028_v58 }
0x22a9   :  { %v1836_v60 = vpop.permute.xlu0 %1835 }
0x22aa   :  { %v1838_v1 = vmul.f32 %v2715_v59, %v1836_v60  ;;  %v2068_v60 = vsub.s32 6, %v2008_v36 }
0x22ac   :  { %1840 = vrot.lane.b32.xlu1 %v1838_v1, %s2787_s16  ;;  %v2069_v1 = vrot.slane %v2006_v40, %v2068_v60 }
0x231e   :  { %v1841_v61 = vpop.permute.xlu1 %1840 }
0x231f   :  { %v1843_v62 = vadd.f32 %v1841_v61, %v1833_v43 }
0x2321   :  { %2716 = vtanh.f32 %v1843_v62 }
0x232b   :  { %v2717_v63 = vpop.eup %2716 }
0x232c   :  { %1846 = vrot.lane.b32.xlu0 %v2717_v63, %s2786_s4  ;;  %v2078_v63 = vsub.s32 7, %v2008_v36 }
0x239e   :  { %v1847_v2 = vpop.permute.xlu0 %1846 }
0x239f   :  { %v3292_v3 = vmul.f32 %v2715_v59, %v1847_v2  ;;  %v2059_v59 = vrot.slane %v2006_v40, %v2058_v57 }
0x23a1   :  { %v1850_v8 = vpack.c.bf16 %v3292_v3, %v3292_v3 }
0x23a3   :  { %1852 = vrot.lane.b32.xlu1 %v1850_v8, %s2787_s16  ;;  %v2079_v8 = vrot.slane %v2006_v40, %v2078_v63 }
0x2415   :  { %v1853_v4 = vpop.permute.xlu1 %1852 }
0x2416   :  { %2502 = vmatmul.mubr.msk.bf16.vlgmr.msra.gmra.mrb[28].mxu0 %vm459_vm3, %v1853_v4 }
0x24e9   :  { %v1891_v5 = vpop.f32.mrb[28].mxu0 }
0x24ea   :  { %v2527_v6 = vadd.f32 %v3185_v49, %v1891_v5  ;;  %v2503_v7 = vpop.f32.mrb[29].mxu0 }
0x24eb   :  { %v1894_v10 = vpop.f32.mrb[30].mxu0 }
0x24ec   :  { %2718 = vtanh.f32 %v2527_v6  ;;  %v2504_v11 = vpop.f32.mrb[31].mxu0  ;;  %v2179_v14 = vmul.f32 -1.442695, %v2527_v6 }
0x24ee   :  { %2720 = vpow2.f32 %v2179_v14 }
0x24f6   :  { %v2719_v13 = vpop.eup %2718 }
0x24f7   :  { %1907 = vrot.lane.b32.xlu0 %v2719_v13, %s2786_s4 }
0x24f8   :  { %v2721_v15 = vpop.eup %2720 }
0x24f9   :  { %v1901_v16 = vadd.f32 1.0, %v2721_v15 }
0x24fb   :  { %2722 = vrcp.f32 %v1901_v16 }
0x2505   :  { %v2723_v17 = vpop.eup %2722 }
0x2506   :  { %v1905_v18 = vmul.f32 %v2723_v17, %v1843_v62 }
0x2569   :  { %v1908_v20 = vpop.permute.xlu0 %1907 }
0x256a   :  { %v1910_v21 = vmul.f32 %v2723_v17, %v1908_v20 }
0x256c   :  { %1912 = vrot.lane.b32.xlu1 %v1910_v21, %s2787_s16 }
0x25de   :  { %v1913_v22 = vpop.permute.xlu1 %1912 }
0x25df   :  { %v1915_v23 = vadd.f32 %v1913_v22, %v1905_v18 }
0x25e1   :  { %2724 = vtanh.f32 %v1915_v23 }
0x25eb   :  { %v2725_v25 = vpop.eup %2724 }
0x25ec   :  { %1918 = vrot.lane.b32.xlu0 %v2725_v25, %s2786_s4 }
0x265e   :  { %v1919_v26 = vpop.permute.xlu0 %1918 }
0x265f   :  { %v3302_v27 = vmul.f32 %v2723_v17, %v1919_v26 }
0x2661   :  { %v1922_v28 = vpack.c.bf16 %v3302_v27, %v3302_v27 }
0x2663   :  { %1924 = vrot.lane.b32.xlu1 %v1922_v28, %s2787_s16 }
0x26d5   :  { %v1925_v29 = vpop.permute.xlu1 %1924 }
0x26d6   :  { %2510 = vmatmul.mubr.msk.bf16.vlgmr.msra.gmra.mrb[28].mxu1 %vm459_vm3, %v1925_v29 }
0x27a9   :  { %v1963_v30 = vpop.f32.mrb[28].mxu1 }
0x27aa   :  { %v2528_v31 = vadd.f32 %v3185_v49, %v1963_v30  ;;  %v2511_v32 = vpop.f32.mrb[29].mxu1  ;;  %v2049_v49 = vrot.slane %v2006_v40, %v2048_v46 }
0x27ab   :  { %v1966_v33 = vpop.f32.mrb[30].mxu1  ;;  %v2184_v32 = vld [vmem:[#allocation2] ss:$0 sm:$0xff] }
0x27ac   :  { %2726 = vtanh.f32 %v2528_v31  ;;  %v2512_v35 = vpop.f32.mrb[31].mxu1  ;;  %v2181_v48 = vmul.f32 -1.442695, %v2528_v31 }
0x27ae   :  { %2728 = vpow2.f32 %v2181_v48 }
0x27b6   :  { %v2727_v42 = vpop.eup %2726 }
0x27b7   :  { %1979 = vrot.lane.b32.xlu0 %v2727_v42, %s2786_s4 }
0x27b8   :  { %v2729_v50 = vpop.eup %2728 }
0x27b9   :  { %v1973_v51 = vadd.f32 1.0, %v2729_v50 }
0x27bb   :  { %2012 = vrot.lane.b32.xlu0 %v2010_v44, %s2788_s2  ;;  %2730 = vrcp.f32 %v1973_v51 }
0x27bf   :  { %2031 = vrot.lane.b32.xlu0 %v2029_v39, %s2788_s2 }
0x27c3   :  { %2051 = vrot.lane.b32.xlu0 %v2049_v49, %s2788_s2 }
0x27c5   :  { %v2731_v53 = vpop.eup %2730 }
0x27c6   :  { %v1977_v43 = vmul.f32 %v2731_v53, %v1915_v23 }
0x2829   :  { %v1980_v54 = vpop.permute.xlu0 %1979 }
0x282a   :  { %v1982_v55 = vmul.f32 %v2731_v53, %v1980_v54 }
0x282c   :  { %1984 = vrot.lane.b32.xlu1 %v1982_v55, %s2787_s16 }
0x282d   :  { %v2013_v4 = vpop.permute.xlu0 %2012 }
0x282e   :  { %v2015_v7 = vmul.f32 %v2013_v4, %v3207_v38 }
0x2830   :  { %2021 = vrot.lane.b32.xlu1 %v2019_v12, %s2788_s2 }
0x2831   :  { %v2032_v10 = vpop.permute.xlu0 %2031 }
0x2832   :  { %v2034_v14 = vmul.f32 %v2032_v10, %v3246_v0 }
0x2834   :  { %2041 = vrot.lane.b32.xlu1 %v2039_v41, %s2788_s2 }
0x2835   :  { %v2052_v20 = vpop.permute.xlu0 %2051 }
0x2836   :  { %v2054_v18 = vmul.f32 %v2052_v20, %v3277_v47 }
0x2838   :  { %2061 = vrot.lane.b32.xlu1 %v2059_v59, %s2788_s2 }
0x283c   :  { %2071 = vrot.lane.b32.xlu1 %v2069_v1, %s2788_s2 }
0x289e   :  { %v1985_v61 = vpop.permute.xlu1 %1984 }
0x289f   :  { %v1987_v62 = vadd.f32 %v1985_v61, %v1977_v43 }
0x28a1   :  { %2732 = vtanh.f32 %v1987_v62 }
0x28a2   :  { %v2022_v5 = vpop.permute.xlu1 %2021 }
0x28a3   :  { %v2024_v6 = vmul.f32 %v2022_v5, %v3230_v45 }
0x28a5   :  { %v2025_v13 = vadd.f32 %v2024_v6, %v2015_v7 }
0x28a6   :  { %v2042_v11 = vpop.permute.xlu1 %2041 }
0x28a7   :  { %v2035_v15 = vadd.f32 %v2034_v14, %v2025_v13  ;;  %v2044_v16 = vmul.f32 %v2042_v11, %v3262_v24 }
0x28a9   :  { %v2045_v21 = vadd.f32 %v2044_v16, %v2035_v15 }
0x28aa   :  { %v2062_v17 = vpop.permute.xlu1 %2061 }
0x28ab   :  { %v2733_v2 = vpop.eup %2732  ;;  %v2055_v23 = vadd.f32 %v2054_v18, %v2045_v21  ;;  %v2064_v25 = vmul.f32 %v2062_v17, %v3292_v3 }
0x28ac   :  { %1990 = vrot.lane.b32.xlu0 %v2733_v2, %s2786_s4 }
0x28ad   :  { %v2065_v26 = vadd.f32 %v2064_v25, %v2055_v23 }
0x28ae   :  { %v2072_v22 = vpop.permute.xlu1 %2071 }
0x28af   :  { %v2074_v38 = vmul.f32 %v2072_v22, %v3302_v27 }
0x28b0   :  { %2081 = vrot.lane.b32.xlu0 %v2079_v8, %s2788_s2 }
0x28b1   :  { %v2075_v30 = vadd.f32 %v2074_v38, %v2065_v26 }
0x291e   :  { %v1991_v45 = vpop.permute.xlu0 %1990 }
0x291f   :  { %v1993_v28 = vmul.f32 %v2731_v53, %v1991_v45 }
0x2922   :  { %v2082_v29 = vpop.permute.xlu0 %2081 }
0x2923   :  { %v2084_v0 = vmul.f32 %v2082_v29, %v1993_v28 }
0x2925   :  { %v2085_v31 = vadd.f32 %v2084_v0, %v2075_v30 }
0x2927   :  { %2087 = vrot.lane.b32.xlu1 %v2085_v31, %s2787_s16 }
0x292b   :  { %1037 = vrot.lane.b32.xlu1 %v3202_v19, %s2787_s16 }
0x292f   :  { %1043 = vrot.lane.b32.xlu1 %v3197_v9, %s2788_s2 }
0x2933   :  { %1995 = vrot.lane.b32.xlu1 %v1993_v28, %s2787_s16 }
0x2937   :  { %2001 = vrot.lane.b32.xlu1 %v1987_v62, %s2788_s2 }
0x2999   :  { %v2088_v24 = vpop.permute.xlu1 %2087 }
0x299a   :  { %v2090_v47 = vsel %vm1040_vm4, %v2088_v24, 0.0 }
0x299b   :  { %2091 = vadd.xlane.f32.xlu0 %v2090_v47 }
0x299d   :  { %v1038_v3 = vpop.permute.xlu1 %1037 }
0x299e   :  { %1041 = vst.msk [vmem:[%s3361_s12] sm:$0x3] %vm1040_vm4, %v1038_v3 }
0x29a1   :  { %v1044_v27 = vpop.permute.xlu1 %1043 }
0x29a2   :  { %1046 = vst.msk [vmem:[%s3362_s13] sm:$0x3] %vm1040_vm4, %v1044_v27 }
0x29a5   :  { %v1996_v19 = vpop.permute.xlu1 %1995 }
0x29a6   :  { %2182 = vst.msk [vmem:[%s3361_s12 + $0x2] sm:$0x3] %vm1040_vm4, %v1996_v19 }
0x29a9   :  { %v2002_v9 = vpop.permute.xlu1 %2001 }
0x29aa   :  { %2183 = vst.msk [vmem:[%s3362_s13 + $0x2] sm:$0x3] %vm1040_vm4, %v2002_v9 }
0x2a28   :  { %v2092_v33 = vpop.xlane.xlu0 %2091 }
0x2a29   :  { %v2100_v34 = vadd.f32 %v2184_v32, %v2092_v33 }
0x2a2b   :  { %2102 = vst.msk [vmem:[%s3360_s11] sm:$0x3] %vm2101_vm5, %v2100_v34 }
0x2a2c   :  { %2115 = vsyncpa [#allocation4], 1 }
0x2a2d   :  { %2116 = vsyncpa [#allocation6], 1 }

</bundles_post_ra>
